<compile_context>
chip_gen: v6e
topology: v6e:2x2x1
jax: 0.10.0
libtpu: 0.0.40
codegen_flags: <defaults>
</compile_context>

<pallas_src>
from functools import partial

import numpy as np
import jax
import jax.numpy as jnp
from jax.experimental import pallas as pl
from jax.experimental.pallas import tpu as pltpu

# ----------------------------- sizes ---------------------------------------
V = 256          # vertices (real SMPL: 6890) -- small synthetic size
NJ = 24          # joints
NSHAPE = 10      # shape coefficients
NPOSE = 207      # pose blendshape basis = 23 * 9
V3 = 3 * V       # flat channel-major vertex vector length

SMPL_PARENTS = np.array(
    [-1, 0, 0, 0, 1, 2, 3, 4, 5, 6, 7, 8, 9, 9, 9, 12, 13, 14, 16, 17, 18,
     19, 20, 21], dtype=np.int64)


def _compute_levels(parents):
    """Static joint groups at equal tree depth (SMPL: 9 levels)."""
    depth = np.zeros(len(parents), dtype=np.int64)
    for i in range(1, len(parents)):
        depth[i] = depth[parents[i]] + 1
    return [np.nonzero(depth == d)[0] for d in range(int(depth.max()) + 1)]


SMPL_LEVELS = _compute_levels(SMPL_PARENTS)


def _pick_batch_tile(B):
    """Batch rows per grid step (fills MXU M) and padded batch size."""
    if B <= 128:
        return B, B
    tb = 128
    return tb, ((B + tb - 1) // tb) * tb


def _pad_rows(x, n):
    if x.shape[0] == n:
        return x
    return jnp.pad(x, [(0, n - x.shape[0])] + [(0, 0)] * (x.ndim - 1))


# ----------------------------- pallas_call wrappers -------------------------
def shape_pose_joint_pallas(betas, pose_feature, params, tb):
    """Fused shape-blend + pose-blend + joint regression, batched over TB rows.

    betas: (Bp, NSHAPE)  pose_feature: (Bp, NPOSE)
    returns vposed_flat (Bp, 3V) channel-major and joints (Bp, 3, NJ).
    """
    Bp = betas.shape[0]
    nb = Bp // tb

    def kernel(betas_ref, pf_ref, vtemp_ref, sdirs_ref, pdirs_ref, jregT_ref,
               vps_ref, j_ref):
        # (TB,10)@(10,3V) and (TB,207)@(207,3V): MXU rows filled by the batch.
        vsh = vtemp_ref[...] + jnp.dot(betas_ref[...], sdirs_ref[...],
                                       preferred_element_type=jnp.float32)
        vps_ref[...] = vsh + jnp.dot(pf_ref[...], pdirs_ref[...],
                                     preferred_element_type=jnp.float32)
        # fused joint regression; x/y/z slices are 128-aligned for V=256 so
        # they stay zero-cost views.
        jreg = jregT_ref[...]                                        # (V, NJ)
        j_ref[:, 0:1, :] = jnp.dot(vsh[:, 0:V], jreg,
                                   preferred_element_type=jnp.float32)[:, None, :]
        j_ref[:, 1:2, :] = jnp.dot(vsh[:, V:2 * V], jreg,
                                   preferred_element_type=jnp.float32)[:, None, :]
        j_ref[:, 2:3, :] = jnp.dot(vsh[:, 2 * V:3 * V], jreg,
                                   preferred_element_type=jnp.float32)[:, None, :]

    return pl.pallas_call(
        kernel,
        out_shape=[jax.ShapeDtypeStruct((Bp, V3), jnp.float32),
                   jax.ShapeDtypeStruct((Bp, 3, NJ), jnp.float32)],
        grid_spec=pltpu.PrefetchScalarGridSpec(
            num_scalar_prefetch=0, grid=(nb,),
            in_specs=[
                pl.BlockSpec((tb, NSHAPE), lambda b: (b, 0)),
                pl.BlockSpec((tb, NPOSE), lambda b: (b, 0)),
                pl.BlockSpec((1, V3), lambda b: (0, 0)),
                pl.BlockSpec((NSHAPE, V3), lambda b: (0, 0)),
                pl.BlockSpec((NPOSE, V3), lambda b: (0, 0)),
                pl.BlockSpec((V, NJ), lambda b: (0, 0)),
            ],
            out_specs=[
                pl.BlockSpec((tb, V3), lambda b: (b, 0)),
                pl.BlockSpec((tb, 3, NJ), lambda b: (b, 0, 0)),
            ]),
        compiler_params=pltpu.CompilerParams(
            dimension_semantics=("parallel",)),
    )(betas, pose_feature, params['v_template_flat'], params['shapedirs_flat'],
      params['posedirs_flat'], params['J_regressor_T'])


def skinning_pallas(A2_flat, transl_cf, weights_T, vposed_flat, tb):
    """Linear blend skinning, batched over TB rows per grid step.

    A2_flat: (Bp*12, NJ) rows of (scale*R_global)@A_j[:3,:4] (transposed)
    transl_cf: (Bp, 3, 1)   weights_T: (NJ, V)   vposed_flat: (Bp, 3V)
    returns vertices (Bp, 3, V) channels-first.
    """
    Bp = transl_cf.shape[0]
    nb = Bp // tb

    def kernel(a_ref, t_ref, w_ref, vp_ref, out_ref):
        # one (12*TB, 24)@(24, V) MXU matmul for the whole tile
        T = jnp.dot(a_ref[...], w_ref[...],
                    preferred_element_type=jnp.float32)          # (12*TB, V)
        vp = vp_ref[...]                                         # (TB, 3V)
        t = t_ref[...]                                           # (TB, 3, 1)
        for i in range(tb):                                      # unrolled FMAs
            x = vp[i:i + 1, 0:V]
            y = vp[i:i + 1, V:2 * V]
            z = vp[i:i + 1, 2 * V:3 * V]
            Ti = T[12 * i:12 * (i + 1)]
            out_ref[i, 0:1, :] = (Ti[0:1] * x + Ti[1:2] * y + Ti[2:3] * z
                                  + Ti[3:4] + t[i, 0:1, :])
            out_ref[i, 1:2, :] = (Ti[4:5] * x + Ti[5:6] * y + Ti[6:7] * z
                                  + Ti[7:8] + t[i, 1:2, :])
            out_ref[i, 2:3, :] = (Ti[8:9] * x + Ti[9:10] * y + Ti[10:11] * z
                                  + Ti[11:12] + t[i, 2:3, :])

    return pl.pallas_call(
        kernel,
        out_shape=jax.ShapeDtypeStruct((Bp, 3, V), jnp.float32),
        grid_spec=pltpu.PrefetchScalarGridSpec(
            num_scalar_prefetch=0, grid=(nb,),
            in_specs=[
                pl.BlockSpec((tb * 12, NJ), lambda b: (b, 0)),
                pl.BlockSpec((tb, 3, 1), lambda b: (b, 0, 0)),
                pl.BlockSpec((NJ, V), lambda b: (0, 0)),
                pl.BlockSpec((tb, V3), lambda b: (b, 0)),
            ],
            out_specs=pl.BlockSpec((tb, 3, V), lambda b: (b, 0, 0))),
        compiler_params=pltpu.CompilerParams(
            dimension_semantics=("parallel",)),
    )(A2_flat, transl_cf, weights_T, vposed_flat)


# ----------------------------- plain-JAX glue --------------------------------
def batch_rodrigues(rot_vecs):
    # rot_vecs: (N, 3) axis-angle -> (N, 3, 3) rotation matrices
    angle = jnp.linalg.norm(rot_vecs + 1e-8, axis=1, keepdims=True)   # (N, 1)
    rot_dir = rot_vecs / angle
    cos = jnp.cos(angle)[:, None]                                     # (N,1,1)
    sin = jnp.sin(angle)[:, None]
    rx, ry, rz = rot_dir[:, 0], rot_dir[:, 1], rot_dir[:, 2]
    zeros = jnp.zeros_like(rx)
    K = jnp.stack([zeros, -rz, ry, rz, zeros, -rx, -ry, rx, zeros],
                  axis=1).reshape(-1, 3, 3)
    ident = jnp.eye(3, dtype=rot_vecs.dtype)[None]
    return ident + sin * K + (1.0 - cos) * jnp.matmul(K, K)


def batch_rigid_transform(rot_mats, joints, parents, levels):
    # Level-by-level kinematic chain: all joints at the same tree depth are
    # composed in one batched (B, L, 4, 4) matmul (SMPL depth <= 8), cutting
    # the serial dependency chain ~3x vs a 23-step per-joint loop.
    # TODO(synk): this stays in plain JAX -- tiny dependent 4x4 matmuls give
    # no useful Pallas parallelism.
    B = joints.shape[0]
    nj = joints.shape[1]
    rel_joints = jnp.concatenate(
        [joints[:, :1], joints[:, 1:] - joints[:, parents[1:]]], axis=1)
    top = jnp.concatenate([rot_mats, rel_joints[..., None]], axis=-1)  # (B,J,3,4)
    bottom = jnp.broadcast_to(
        jnp.array([0.0, 0.0, 0.0, 1.0], dtype=joints.dtype)[None, None, None, :],
        (B, nj, 1, 4))
    transforms_mat = jnp.concatenate([top, bottom], axis=2)            # (B,J,4,4)

    out = [None] * nj
    out[0] = transforms_mat[:, 0]
    for lvl in levels[1:]:
        par = jnp.stack([out[int(parents[j])] for j in lvl], axis=1)   # (B,L,4,4)
        cur = transforms_mat[:, np.asarray(lvl)]                       # (B,L,4,4)
        res = jnp.matmul(par, cur)
        for idx, j in enumerate(lvl):
            out[int(j)] = res[:, idx]
    transforms = jnp.stack(out, axis=1)                                # (B,J,4,4)

    posed_joints = transforms[:, :, :3, 3]
    Rj = jnp.einsum('bjmn,bjn->bjm', transforms[:, :, :3, :3], joints)
    fix = jnp.concatenate([Rj, jnp.zeros((B, nj, 1), joints.dtype)], axis=-1)
    rel_transforms = transforms.at[:, :, :, 3].add(-fix)
    return posed_joints, rel_transforms


@partial(jax.jit, static_argnames=("scale",))
def smpl_forward(poses, shapes, Rh, Th, params, scale=1.0):
    """poses (B,72), shapes (B,10), Rh (B,3), Th (B,3) -> vertices[0] (V,3)."""
    bn = poses.shape[0]
    rot = batch_rodrigues(Rh)                                   # (B,3,3)
    if shapes.shape[0] < bn:
        shapes = jnp.broadcast_to(shapes, (bn, shapes.shape[1]))

    rot_mats = batch_rodrigues(poses.reshape(-1, 3)).reshape(bn, NJ, 3, 3)
    pose_feature = (rot_mats[:, 1:] -
                    jnp.eye(3, dtype=poses.dtype)[None, None]).reshape(bn, NPOSE)

    tb, b_pad = _pick_batch_tile(bn)

    # fused shape-blend + pose-blend + joint regression (batched over TB)
    vposed_flat, J_cf = shape_pose_joint_pallas(
        _pad_rows(shapes, b_pad), _pad_rows(pose_feature, b_pad), params, tb)
    J = jnp.transpose(J_cf[:bn], (0, 2, 1))                     # (B,24,3)

    _, A = batch_rigid_transform(rot_mats, J, SMPL_PARENTS, SMPL_LEVELS)

    # fold global rotation and scale into the per-joint LBS transforms:
    # verts = (scale*R_global) @ (A[:3,:4] [v;1]) + Th  ==  (v@rot.T)*scale + Th
    RS = rot * scale                                            # (B,3,3)
    A2 = jnp.einsum('bpq,bjqr->bjpr', RS, A[:, :, :3, :])       # (B,24,3,4)
    A2_T = jnp.transpose(A2.reshape(bn, NJ, 12), (0, 2, 1))     # (B,12,24)
    A2_flat = _pad_rows(A2_T, b_pad).reshape(b_pad * 12, NJ)    # (Bp*12,24)

    verts_cf = skinning_pallas(A2_flat, _pad_rows(Th[:, :, None], b_pad),
                               params['weights_T'], vposed_flat, tb)
    return verts_cf[0].T                                        # (V,3)


# ----------------------------- main ------------------------------------------
if __name__ == "__main__":
    B = 2
    key = jax.random.PRNGKey(0)
    ks = jax.random.split(key, 10)

    # deterministic synthetic SMPL parameters (shapes per body_model.py buffers)
    # TODO(synk): .pkl loading, faces buffer and the regressor_path (j_*) branch
    # are not reproduced -- synthetic buffers stand in for the pickled model.
    v_template = jax.random.normal(ks[0], (V, 3), jnp.float32) * 0.1
    shapedirs = jax.random.normal(ks[1], (V, 3, NSHAPE), jnp.float32) * 0.01
    posedirs_raw = jax.random.normal(ks[2], (V, 3, NPOSE), jnp.float32) * 0.01
    J_regressor = jax.nn.softmax(
        jax.random.normal(ks[3], (NJ, V), jnp.float32), axis=1)
    weights = jax.nn.softmax(
        jax.random.normal(ks[4], (V, NJ), jnp.float32), axis=1)

    # channel-major (lane-dense) re-layouts, done once on the host
    params = {
        'v_template_flat': v_template.T.reshape(1, V3),                              # (1,3V)
        'shapedirs_flat': jnp.transpose(shapedirs, (2, 1, 0)).reshape(NSHAPE, V3),   # (10,3V)
        'posedirs_flat': jnp.transpose(posedirs_raw, (2, 1, 0)).reshape(NPOSE, V3),  # (207,3V)
        'J_regressor_T': J_regressor.T,                                              # (V,24)
        'weights_T': weights.T,                                                      # (24,V)
    }
    # NOTE: at real SMPL size (V=6890) cast shapedirs_flat / posedirs_flat /
    # weights_T to bfloat16 (f32 accumulation stays) to halve DMA bytes.

    # example inputs (module forward: poses (n,72), shapes (n,10), Rh/Th (n,3))
    poses = jax.random.normal(ks[5], (B, 72), jnp.float32) * 0.2
    shapes = jax.random.normal(ks[6], (B, NSHAPE), jnp.float32) * 0.5
    Rh = jax.random.normal(ks[7], (B, 3), jnp.float32) * 0.3
    Th = jax.random.normal(ks[8], (B, 3), jnp.float32) * 0.1

    verts0 = smpl_forward(poses, shapes, Rh, Th, params, scale=1.0)
    jax.block_until_ready(verts0)
    assert verts0.shape == (V, 3) and bool(jnp.all(jnp.isfinite(verts0)))
    print("KERNEL_OK")
</pallas_src>

<mosaic_0001>
module attributes {stable_mosaic.version = 11 : i64} {
  func.func @kernel(%arg0: i32, %arg1: memref<2x10xf32, #tpu.memory_space<vmem>>, %arg2: memref<2x207xf32, #tpu.memory_space<vmem>>, %arg3: memref<1x768xf32, #tpu.memory_space<vmem>>, %arg4: memref<10x768xf32, #tpu.memory_space<vmem>>, %arg5: memref<207x768xf32, #tpu.memory_space<vmem>>, %arg6: memref<256x24xf32, #tpu.memory_space<vmem>>, %arg7: memref<2x768xf32, #tpu.memory_space<vmem>>, %arg8: memref<2x3x24xf32, #tpu.memory_space<vmem>>) attributes {dimension_semantics = [#tpu.dimension_semantics<parallel>], iteration_bounds = array<i64: 1>, scalar_prefetch = 0 : i64, scratch_operands = 0 : i64, tpu.core_type = #tpu.core_type<tc>, window_params = [{transform_indices = @transform_0, window_bounds = array<i64: 2, 10>}, {transform_indices = @transform_1, window_bounds = array<i64: 2, 207>}, {pipeline_mode = #tpu.pipeline_mode<synchronous>, transform_indices = @transform_2, window_bounds = array<i64: 1, 768>}, {pipeline_mode = #tpu.pipeline_mode<synchronous>, transform_indices = @transform_3, window_bounds = array<i64: 10, 768>}, {pipeline_mode = #tpu.pipeline_mode<synchronous>, transform_indices = @transform_4, window_bounds = array<i64: 207, 768>}, {pipeline_mode = #tpu.pipeline_mode<synchronous>, transform_indices = @transform_5, window_bounds = array<i64: 256, 24>}, {transform_indices = @transform_6, window_bounds = array<i64: 2, 768>}, {transform_indices = @transform_7, window_bounds = array<i64: 2, 3, 24>}]} {
    %c0 = arith.constant 0 : index
    %c0_0 = arith.constant 0 : index
    %0 = vector.load %arg3[%c0, %c0_0] : memref<1x768xf32, #tpu.memory_space<vmem>>, vector<1x768xf32>
    %c0_1 = arith.constant 0 : index
    %c0_2 = arith.constant 0 : index
    %1 = vector.load %arg1[%c0_1, %c0_2] : memref<2x10xf32, #tpu.memory_space<vmem>>, vector<2x10xf32>
    %c0_3 = arith.constant 0 : index
    %c0_4 = arith.constant 0 : index
    %2 = vector.load %arg4[%c0_3, %c0_4] : memref<10x768xf32, #tpu.memory_space<vmem>>, vector<10x768xf32>
    %cst = arith.constant dense<0.000000e+00> : vector<2x768xf32>
    %3 = tpu.matmul %1, %2, %cst {dimension_numbers = #tpu.dot_dimension_numbers<[1], [0], [0], [1], [0, 0, 1, 1], [], []>} : vector<2x10xf32>, vector<10x768xf32>, vector<2x768xf32> -> vector<2x768xf32>
    %4 = vector.broadcast %0 : vector<1x768xf32> to vector<2x768xf32>
    %5 = arith.addf %4, %3 : vector<2x768xf32>
    %c0_5 = arith.constant 0 : index
    %c0_6 = arith.constant 0 : index
    %6 = vector.load %arg2[%c0_5, %c0_6] : memref<2x207xf32, #tpu.memory_space<vmem>>, vector<2x207xf32>
    %c0_7 = arith.constant 0 : index
    %c0_8 = arith.constant 0 : index
    %7 = vector.load %arg5[%c0_7, %c0_8] : memref<207x768xf32, #tpu.memory_space<vmem>>, vector<207x768xf32>
    %cst_9 = arith.constant dense<0.000000e+00> : vector<2x768xf32>
    %8 = tpu.matmul %6, %7, %cst_9 {dimension_numbers = #tpu.dot_dimension_numbers<[1], [0], [0], [1], [0, 0, 1, 1], [], []>} : vector<2x207xf32>, vector<207x768xf32>, vector<2x768xf32> -> vector<2x768xf32>
    %9 = arith.addf %5, %8 : vector<2x768xf32>
    %c0_10 = arith.constant 0 : index
    %c0_11 = arith.constant 0 : index
    %10 = vector.load %arg7[%c0_10, %c0_11] : memref<2x768xf32, #tpu.memory_space<vmem>>, vector<2x768xf32>
    tpu.vector_store %arg7[%c0_10, %c0_11], %9 {strides = array<i32>} : memref<2x768xf32, #tpu.memory_space<vmem>>, vector<2x768xf32>,
    %c0_12 = arith.constant 0 : index
    %c0_13 = arith.constant 0 : index
    %11 = vector.load %arg6[%c0_12, %c0_13] : memref<256x24xf32, #tpu.memory_space<vmem>>, vector<256x24xf32>
    %12 = vector.extract_strided_slice %5 {offsets = [0, 0], sizes = [2, 256], strides = [1, 1]} : vector<2x768xf32> to vector<2x256xf32>
    %cst_14 = arith.constant dense<0.000000e+00> : vector<2x24xf32>
    %13 = tpu.matmul %12, %11, %cst_14 {dimension_numbers = #tpu.dot_dimension_numbers<[1], [0], [0], [1], [0, 0, 1, 1], [], []>} : vector<2x256xf32>, vector<256x24xf32>, vector<2x24xf32> -> vector<2x24xf32>
    %14 = vector.shape_cast %13 : vector<2x24xf32> to vector<2x1x24xf32>
    %c0_15 = arith.constant 0 : index
    %c0_16 = arith.constant 0 : index
    %c0_17 = arith.constant 0 : index
    %15 = vector.load %arg8[%c0_15, %c0_16, %c0_17] : memref<2x3x24xf32, #tpu.memory_space<vmem>>, vector<2x1x24xf32>
    tpu.vector_store %arg8[%c0_15, %c0_16, %c0_17], %14 {strides = array<i32>} : memref<2x3x24xf32, #tpu.memory_space<vmem>>, vector<2x1x24xf32>,
    %16 = vector.extract_strided_slice %5 {offsets = [0, 256], sizes = [2, 256], strides = [1, 1]} : vector<2x768xf32> to vector<2x256xf32>
    %cst_18 = arith.constant dense<0.000000e+00> : vector<2x24xf32>
    %17 = tpu.matmul %16, %11, %cst_18 {dimension_numbers = #tpu.dot_dimension_numbers<[1], [0], [0], [1], [0, 0, 1, 1], [], []>} : vector<2x256xf32>, vector<256x24xf32>, vector<2x24xf32> -> vector<2x24xf32>
    %18 = vector.shape_cast %17 : vector<2x24xf32> to vector<2x1x24xf32>
    %c0_19 = arith.constant 0 : index
    %c1 = arith.constant 1 : index
    %c0_20 = arith.constant 0 : index
    %19 = vector.load %arg8[%c0_19, %c1, %c0_20] : memref<2x3x24xf32, #tpu.memory_space<vmem>>, vector<2x1x24xf32>
    tpu.vector_store %arg8[%c0_19, %c1, %c0_20], %18 {strides = array<i32>} : memref<2x3x24xf32, #tpu.memory_space<vmem>>, vector<2x1x24xf32>,
    %20 = vector.extract_strided_slice %5 {offsets = [0, 512], sizes = [2, 256], strides = [1, 1]} : vector<2x768xf32> to vector<2x256xf32>
    %cst_21 = arith.constant dense<0.000000e+00> : vector<2x24xf32>
    %21 = tpu.matmul %20, %11, %cst_21 {dimension_numbers = #tpu.dot_dimension_numbers<[1], [0], [0], [1], [0, 0, 1, 1], [], []>} : vector<2x256xf32>, vector<256x24xf32>, vector<2x24xf32> -> vector<2x24xf32>
    %22 = vector.shape_cast %21 : vector<2x24xf32> to vector<2x1x24xf32>
    %c0_22 = arith.constant 0 : index
    %c2 = arith.constant 2 : index
    %c0_23 = arith.constant 0 : index
    %23 = vector.load %arg8[%c0_22, %c2, %c0_23] : memref<2x3x24xf32, #tpu.memory_space<vmem>>, vector<2x1x24xf32>
    tpu.vector_store %arg8[%c0_22, %c2, %c0_23], %22 {strides = array<i32>} : memref<2x3x24xf32, #tpu.memory_space<vmem>>, vector<2x1x24xf32>,
    return
  }
  func.func @transform_0(%arg0: i32) -> (i32, i32) {
    %c0_i32 = arith.constant 0 : i32
    %c0_i32_0 = arith.constant 0 : i32
    return %arg0, %c0_i32 : i32, i32
  }
  func.func @transform_1(%arg0: i32) -> (i32, i32) {
    %c0_i32 = arith.constant 0 : i32
    %c0_i32_0 = arith.constant 0 : i32
    return %arg0, %c0_i32 : i32, i32
  }
  func.func @transform_2(%arg0: i32) -> (i32, i32) {
    %c0_i32 = arith.constant 0 : i32
    %c0_i32_0 = arith.constant 0 : i32
    %c0_i32_1 = arith.constant 0 : i32
    return %c0_i32, %c0_i32_0 : i32, i32
  }
  func.func @transform_3(%arg0: i32) -> (i32, i32) {
    %c0_i32 = arith.constant 0 : i32
    %c0_i32_0 = arith.constant 0 : i32
    %c0_i32_1 = arith.constant 0 : i32
    return %c0_i32, %c0_i32_0 : i32, i32
  }
  func.func @transform_4(%arg0: i32) -> (i32, i32) {
    %c0_i32 = arith.constant 0 : i32
    %c0_i32_0 = arith.constant 0 : i32
    %c0_i32_1 = arith.constant 0 : i32
    return %c0_i32, %c0_i32_0 : i32, i32
  }
  func.func @transform_5(%arg0: i32) -> (i32, i32) {
    %c0_i32 = arith.constant 0 : i32
    %c0_i32_0 = arith.constant 0 : i32
    %c0_i32_1 = arith.constant 0 : i32
    return %c0_i32, %c0_i32_0 : i32, i32
  }
  func.func @transform_6(%arg0: i32) -> (i32, i32) {
    %c0_i32 = arith.constant 0 : i32
    %c0_i32_0 = arith.constant 0 : i32
    return %arg0, %c0_i32 : i32, i32
  }
  func.func @transform_7(%arg0: i32) -> (i32, i32, i32) {
    %c0_i32 = arith.constant 0 : i32
    %c0_i32_0 = arith.constant 0 : i32
    %c0_i32_1 = arith.constant 0 : i32
    return %arg0, %c0_i32, %c0_i32_0 : i32, i32, i32
  }
}

module attributes {stable_mosaic.version = 11 : i64} {
  func.func @kernel(%arg0: i32, %arg1: memref<24x24xf32, #tpu.memory_space<vmem>>, %arg2: memref<2x3x1xf32, #tpu.memory_space<vmem>>, %arg3: memref<24x256xf32, #tpu.memory_space<vmem>>, %arg4: memref<2x768xf32, #tpu.memory_space<vmem>>, %arg5: memref<2x3x256xf32, #tpu.memory_space<vmem>>) attributes {dimension_semantics = [#tpu.dimension_semantics<parallel>], iteration_bounds = array<i64: 1>, scalar_prefetch = 0 : i64, scratch_operands = 0 : i64, tpu.core_type = #tpu.core_type<tc>, window_params = [{transform_indices = @transform_0, window_bounds = array<i64: 24, 24>}, {transform_indices = @transform_1, window_bounds = array<i64: 2, 3, 1>}, {pipeline_mode = #tpu.pipeline_mode<synchronous>, transform_indices = @transform_2, window_bounds = array<i64: 24, 256>}, {transform_indices = @transform_3, window_bounds = array<i64: 2, 768>}, {transform_indices = @transform_4, window_bounds = array<i64: 2, 3, 256>}]} {
    %c0 = arith.constant 0 : index
    %c0_0 = arith.constant 0 : index
    %0 = vector.load %arg1[%c0, %c0_0] : memref<24x24xf32, #tpu.memory_space<vmem>>, vector<24x24xf32>
    %c0_1 = arith.constant 0 : index
    %c0_2 = arith.constant 0 : index
    %1 = vector.load %arg3[%c0_1, %c0_2] : memref<24x256xf32, #tpu.memory_space<vmem>>, vector<24x256xf32>
    %cst = arith.constant dense<0.000000e+00> : vector<24x256xf32>
    %2 = tpu.matmul %0, %1, %cst {dimension_numbers = #tpu.dot_dimension_numbers<[1], [0], [0], [1], [0, 0, 1, 1], [], []>} : vector<24x24xf32>, vector<24x256xf32>, vector<24x256xf32> -> vector<24x256xf32>
    %c0_3 = arith.constant 0 : index
    %c0_4 = arith.constant 0 : index
    %3 = vector.load %arg4[%c0_3, %c0_4] : memref<2x768xf32, #tpu.memory_space<vmem>>, vector<2x768xf32>
    %c0_5 = arith.constant 0 : index
    %c0_6 = arith.constant 0 : index
    %c0_7 = arith.constant 0 : index
    %4 = vector.load %arg2[%c0_5, %c0_6, %c0_7] : memref<2x3x1xf32, #tpu.memory_space<vmem>>, vector<2x3x1xf32>
    %5 = vector.extract_strided_slice %3 {offsets = [0, 0], sizes = [1, 256], strides = [1, 1]} : vector<2x768xf32> to vector<1x256xf32>
    %6 = vector.extract_strided_slice %3 {offsets = [0, 256], sizes = [1, 256], strides = [1, 1]} : vector<2x768xf32> to vector<1x256xf32>
    %7 = vector.extract_strided_slice %3 {offsets = [0, 512], sizes = [1, 256], strides = [1, 1]} : vector<2x768xf32> to vector<1x256xf32>
    %8 = vector.extract_strided_slice %2 {offsets = [0, 0], sizes = [12, 256], strides = [1, 1]} : vector<24x256xf32> to vector<12x256xf32>
    %9 = vector.extract_strided_slice %8 {offsets = [0, 0], sizes = [1, 256], strides = [1, 1]} : vector<12x256xf32> to vector<1x256xf32>
    %10 = arith.mulf %9, %5 : vector<1x256xf32>
    %11 = vector.extract_strided_slice %8 {offsets = [1, 0], sizes = [1, 256], strides = [1, 1]} : vector<12x256xf32> to vector<1x256xf32>
    %12 = arith.mulf %11, %6 : vector<1x256xf32>
    %13 = arith.addf %10, %12 : vector<1x256xf32>
    %14 = vector.extract_strided_slice %8 {offsets = [2, 0], sizes = [1, 256], strides = [1, 1]} : vector<12x256xf32> to vector<1x256xf32>
    %15 = arith.mulf %14, %7 : vector<1x256xf32>
    %16 = arith.addf %13, %15 : vector<1x256xf32>
    %17 = vector.extract_strided_slice %8 {offsets = [3, 0], sizes = [1, 256], strides = [1, 1]} : vector<12x256xf32> to vector<1x256xf32>
    %18 = arith.addf %16, %17 : vector<1x256xf32>
    %19 = vector.extract_strided_slice %4 {offsets = [0, 0, 0], sizes = [1, 1, 1], strides = [1, 1, 1]} : vector<2x3x1xf32> to vector<1x1x1xf32>
    %20 = vector.shape_cast %19 : vector<1x1x1xf32> to vector<1x1xf32>
    %21 = vector.broadcast %20 : vector<1x1xf32> to vector<1x256xf32>
    %22 = arith.addf %18, %21 : vector<1x256xf32>
    %c0_8 = arith.constant 0 : index
    %c0_9 = arith.constant 0 : index
    %c0_10 = arith.constant 0 : index
    %23 = vector.load %arg5[%c0_8, %c0_9, %c0_10] : memref<2x3x256xf32, #tpu.memory_space<vmem>>, vector<1x1x256xf32>
    %24 = vector.shape_cast %23 : vector<1x1x256xf32> to vector<1x256xf32>
    %25 = vector.shape_cast %22 : vector<1x256xf32> to vector<1x1x256xf32>
    tpu.vector_store %arg5[%c0_8, %c0_9, %c0_10], %25 {strides = array<i32>} : memref<2x3x256xf32, #tpu.memory_space<vmem>>, vector<1x1x256xf32>,
    %26 = vector.extract_strided_slice %8 {offsets = [4, 0], sizes = [1, 256], strides = [1, 1]} : vector<12x256xf32> to vector<1x256xf32>
    %27 = arith.mulf %26, %5 : vector<1x256xf32>
    %28 = vector.extract_strided_slice %8 {offsets = [5, 0], sizes = [1, 256], strides = [1, 1]} : vector<12x256xf32> to vector<1x256xf32>
    %29 = arith.mulf %28, %6 : vector<1x256xf32>
    %30 = arith.addf %27, %29 : vector<1x256xf32>
    %31 = vector.extract_strided_slice %8 {offsets = [6, 0], sizes = [1, 256], strides = [1, 1]} : vector<12x256xf32> to vector<1x256xf32>
    %32 = arith.mulf %31, %7 : vector<1x256xf32>
    %33 = arith.addf %30, %32 : vector<1x256xf32>
    %34 = vector.extract_strided_slice %8 {offsets = [7, 0], sizes = [1, 256], strides = [1, 1]} : vector<12x256xf32> to vector<1x256xf32>
    %35 = arith.addf %33, %34 : vector<1x256xf32>
    %36 = vector.extract_strided_slice %4 {offsets = [0, 1, 0], sizes = [1, 1, 1], strides = [1, 1, 1]} : vector<2x3x1xf32> to vector<1x1x1xf32>
    %37 = vector.shape_cast %36 : vector<1x1x1xf32> to vector<1x1xf32>
    %38 = vector.broadcast %37 : vector<1x1xf32> to vector<1x256xf32>
    %39 = arith.addf %35, %38 : vector<1x256xf32>
    %c0_11 = arith.constant 0 : index
    %c1 = arith.constant 1 : index
    %c0_12 = arith.constant 0 : index
    %40 = vector.load %arg5[%c0_11, %c1, %c0_12] : memref<2x3x256xf32, #tpu.memory_space<vmem>>, vector<1x1x256xf32>
    %41 = vector.shape_cast %40 : vector<1x1x256xf32> to vector<1x256xf32>
    %42 = vector.shape_cast %39 : vector<1x256xf32> to vector<1x1x256xf32>
    tpu.vector_store %arg5[%c0_11, %c1, %c0_12], %42 {strides = array<i32>} : memref<2x3x256xf32, #tpu.memory_space<vmem>>, vector<1x1x256xf32>,
    %43 = vector.extract_strided_slice %8 {offsets = [8, 0], sizes = [1, 256], strides = [1, 1]} : vector<12x256xf32> to vector<1x256xf32>
    %44 = arith.mulf %43, %5 : vector<1x256xf32>
    %45 = vector.extract_strided_slice %8 {offsets = [9, 0], sizes = [1, 256], strides = [1, 1]} : vector<12x256xf32> to vector<1x256xf32>
    %46 = arith.mulf %45, %6 : vector<1x256xf32>
    %47 = arith.addf %44, %46 : vector<1x256xf32>
    %48 = vector.extract_strided_slice %8 {offsets = [10, 0], sizes = [1, 256], strides = [1, 1]} : vector<12x256xf32> to vector<1x256xf32>
    %49 = arith.mulf %48, %7 : vector<1x256xf32>
    %50 = arith.addf %47, %49 : vector<1x256xf32>
    %51 = vector.extract_strided_slice %8 {offsets = [11, 0], sizes = [1, 256], strides = [1, 1]} : vector<12x256xf32> to vector<1x256xf32>
    %52 = arith.addf %50, %51 : vector<1x256xf32>
    %53 = vector.extract_strided_slice %4 {offsets = [0, 2, 0], sizes = [1, 1, 1], strides = [1, 1, 1]} : vector<2x3x1xf32> to vector<1x1x1xf32>
    %54 = vector.shape_cast %53 : vector<1x1x1xf32> to vector<1x1xf32>
    %55 = vector.broadcast %54 : vector<1x1xf32> to vector<1x256xf32>
    %56 = arith.addf %52, %55 : vector<1x256xf32>
    %c0_13 = arith.constant 0 : index
    %c2 = arith.constant 2 : index
    %c0_14 = arith.constant 0 : index
    %57 = vector.load %arg5[%c0_13, %c2, %c0_14] : memref<2x3x256xf32, #tpu.memory_space<vmem>>, vector<1x1x256xf32>
    %58 = vector.shape_cast %57 : vector<1x1x256xf32> to vector<1x256xf32>
    %59 = vector.shape_cast %56 : vector<1x256xf32> to vector<1x1x256xf32>
    tpu.vector_store %arg5[%c0_13, %c2, %c0_14], %59 {strides = array<i32>} : memref<2x3x256xf32, #tpu.memory_space<vmem>>, vector<1x1x256xf32>,
    %60 = vector.extract_strided_slice %3 {offsets = [1, 0], sizes = [1, 256], strides = [1, 1]} : vector<2x768xf32> to vector<1x256xf32>
    %61 = vector.extract_strided_slice %3 {offsets = [1, 256], sizes = [1, 256], strides = [1, 1]} : vector<2x768xf32> to vector<1x256xf32>
    %62 = vector.extract_strided_slice %3 {offsets = [1, 512], sizes = [1, 256], strides = [1, 1]} : vector<2x768xf32> to vector<1x256xf32>
    %63 = vector.extract_strided_slice %2 {offsets = [12, 0], sizes = [12, 256], strides = [1, 1]} : vector<24x256xf32> to vector<12x256xf32>
    %64 = vector.extract_strided_slice %63 {offsets = [0, 0], sizes = [1, 256], strides = [1, 1]} : vector<12x256xf32> to vector<1x256xf32>
    %65 = arith.mulf %64, %60 : vector<1x256xf32>
    %66 = vector.extract_strided_slice %63 {offsets = [1, 0], sizes = [1, 256], strides = [1, 1]} : vector<12x256xf32> to vector<1x256xf32>
    %67 = arith.mulf %66, %61 : vector<1x256xf32>
    %68 = arith.addf %65, %67 : vector<1x256xf32>
    %69 = vector.extract_strided_slice %63 {offsets = [2, 0], sizes = [1, 256], strides = [1, 1]} : vector<12x256xf32> to vector<1x256xf32>
    %70 = arith.mulf %69, %62 : vector<1x256xf32>
    %71 = arith.addf %68, %70 : vector<1x256xf32>
    %72 = vector.extract_strided_slice %63 {offsets = [3, 0], sizes = [1, 256], strides = [1, 1]} : vector<12x256xf32> to vector<1x256xf32>
    %73 = arith.addf %71, %72 : vector<1x256xf32>
    %74 = vector.extract_strided_slice %4 {offsets = [1, 0, 0], sizes = [1, 1, 1], strides = [1, 1, 1]} : vector<2x3x1xf32> to vector<1x1x1xf32>
    %75 = vector.shape_cast %74 : vector<1x1x1xf32> to vector<1x1xf32>
    %76 = vector.broadcast %75 : vector<1x1xf32> to vector<1x256xf32>
    %77 = arith.addf %73, %76 : vector<1x256xf32>
    %c1_15 = arith.constant 1 : index
    %c0_16 = arith.constant 0 : index
    %c0_17 = arith.constant 0 : index
    %78 = vector.load %arg5[%c1_15, %c0_16, %c0_17] : memref<2x3x256xf32, #tpu.memory_space<vmem>>, vector<1x1x256xf32>
    %79 = vector.shape_cast %78 : vector<1x1x256xf32> to vector<1x256xf32>
    %80 = vector.shape_cast %77 : vector<1x256xf32> to vector<1x1x256xf32>
    tpu.vector_store %arg5[%c1_15, %c0_16, %c0_17], %80 {strides = array<i32>} : memref<2x3x256xf32, #tpu.memory_space<vmem>>, vector<1x1x256xf32>,
    %81 = vector.extract_strided_slice %63 {offsets = [4, 0], sizes = [1, 256], strides = [1, 1]} : vector<12x256xf32> to vector<1x256xf32>
    %82 = arith.mulf %81, %60 : vector<1x256xf32>
    %83 = vector.extract_strided_slice %63 {offsets = [5, 0], sizes = [1, 256], strides = [1, 1]} : vector<12x256xf32> to vector<1x256xf32>
    %84 = arith.mulf %83, %61 : vector<1x256xf32>
    %85 = arith.addf %82, %84 : vector<1x256xf32>
    %86 = vector.extract_strided_slice %63 {offsets = [6, 0], sizes = [1, 256], strides = [1, 1]} : vector<12x256xf32> to vector<1x256xf32>
    %87 = arith.mulf %86, %62 : vector<1x256xf32>
    %88 = arith.addf %85, %87 : vector<1x256xf32>
    %89 = vector.extract_strided_slice %63 {offsets = [7, 0], sizes = [1, 256], strides = [1, 1]} : vector<12x256xf32> to vector<1x256xf32>
    %90 = arith.addf %88, %89 : vector<1x256xf32>
    %91 = vector.extract_strided_slice %4 {offsets = [1, 1, 0], sizes = [1, 1, 1], strides = [1, 1, 1]} : vector<2x3x1xf32> to vector<1x1x1xf32>
    %92 = vector.shape_cast %91 : vector<1x1x1xf32> to vector<1x1xf32>
    %93 = vector.broadcast %92 : vector<1x1xf32> to vector<1x256xf32>
    %94 = arith.addf %90, %93 : vector<1x256xf32>
    %c1_18 = arith.constant 1 : index
    %c1_19 = arith.constant 1 : index
    %c0_20 = arith.constant 0 : index
    %95 = vector.load %arg5[%c1_18, %c1_19, %c0_20] : memref<2x3x256xf32, #tpu.memory_space<vmem>>, vector<1x1x256xf32>
    %96 = vector.shape_cast %95 : vector<1x1x256xf32> to vector<1x256xf32>
    %97 = vector.shape_cast %94 : vector<1x256xf32> to vector<1x1x256xf32>
    tpu.vector_store %arg5[%c1_18, %c1_19, %c0_20], %97 {strides = array<i32>} : memref<2x3x256xf32, #tpu.memory_space<vmem>>, vector<1x1x256xf32>,
    %98 = vector.extract_strided_slice %63 {offsets = [8, 0], sizes = [1, 256], strides = [1, 1]} : vector<12x256xf32> to vector<1x256xf32>
    %99 = arith.mulf %98, %60 : vector<1x256xf32>
    %100 = vector.extract_strided_slice %63 {offsets = [9, 0], sizes = [1, 256], strides = [1, 1]} : vector<12x256xf32> to vector<1x256xf32>
    %101 = arith.mulf %100, %61 : vector<1x256xf32>
    %102 = arith.addf %99, %101 : vector<1x256xf32>
    %103 = vector.extract_strided_slice %63 {offsets = [10, 0], sizes = [1, 256], strides = [1, 1]} : vector<12x256xf32> to vector<1x256xf32>
    %104 = arith.mulf %103, %62 : vector<1x256xf32>
    %105 = arith.addf %102, %104 : vector<1x256xf32>
    %106 = vector.extract_strided_slice %63 {offsets = [11, 0], sizes = [1, 256], strides = [1, 1]} : vector<12x256xf32> to vector<1x256xf32>
    %107 = arith.addf %105, %106 : vector<1x256xf32>
    %108 = vector.extract_strided_slice %4 {offsets = [1, 2, 0], sizes = [1, 1, 1], strides = [1, 1, 1]} : vector<2x3x1xf32> to vector<1x1x1xf32>
    %109 = vector.shape_cast %108 : vector<1x1x1xf32> to vector<1x1xf32>
    %110 = vector.broadcast %109 : vector<1x1xf32> to vector<1x256xf32>
    %111 = arith.addf %107, %110 : vector<1x256xf32>
    %c1_21 = arith.constant 1 : index
    %c2_22 = arith.constant 2 : index
    %c0_23 = arith.constant 0 : index
    %112 = vector.load %arg5[%c1_21, %c2_22, %c0_23] : memref<2x3x256xf32, #tpu.memory_space<vmem>>, vector<1x1x256xf32>
    %113 = vector.shape_cast %112 : vector<1x1x256xf32> to vector<1x256xf32>
    %114 = vector.shape_cast %111 : vector<1x256xf32> to vector<1x1x256xf32>
    tpu.vector_store %arg5[%c1_21, %c2_22, %c0_23], %114 {strides = array<i32>} : memref<2x3x256xf32, #tpu.memory_space<vmem>>, vector<1x1x256xf32>,
    return
  }
  func.func @transform_0(%arg0: i32) -> (i32, i32) {
    %c0_i32 = arith.constant 0 : i32
    %c0_i32_0 = arith.constant 0 : i32
    return %arg0, %c0_i32 : i32, i32
  }
  func.func @transform_1(%arg0: i32) -> (i32, i32, i32) {
    %c0_i32 = arith.constant 0 : i32
    %c0_i32_0 = arith.constant 0 : i32
    %c0_i32_1 = arith.constant 0 : i32
    return %arg0, %c0_i32, %c0_i32_0 : i32, i32, i32
  }
  func.func @transform_2(%arg0: i32) -> (i32, i32) {
    %c0_i32 = arith.constant 0 : i32
    %c0_i32_0 = arith.constant 0 : i32
    %c0_i32_1 = arith.constant 0 : i32
    return %c0_i32, %c0_i32_0 : i32, i32
  }
  func.func @transform_3(%arg0: i32) -> (i32, i32) {
    %c0_i32 = arith.constant 0 : i32
    %c0_i32_0 = arith.constant 0 : i32
    return %arg0, %c0_i32 : i32, i32
  }
  func.func @transform_4(%arg0: i32) -> (i32, i32, i32) {
    %c0_i32 = arith.constant 0 : i32
    %c0_i32_0 = arith.constant 0 : i32
    %c0_i32_1 = arith.constant 0 : i32
    return %arg0, %c0_i32, %c0_i32_0 : i32, i32, i32
  }
}

</mosaic_0001>

<bundles_post_ra>
// kernel: smpl_forward.2
= control target key start
LH: loop header
LB: loop body
LE: loop exit
PB: predicated region body
PF: predicated region fallthrough
CT: control target
= control target key end

     0   :  { %vm43_vm0 = vcmask 1041408   ;;  %v1215_v3 = vmov 0.0   ;;  %vm39_vm1 = vcmask 80896   ;;  %vm482_vm2 = vcmask 1046528   ;;  %s2097_s3 = inlined_call_operand.vmem [shape: f32[10,768], index: 3, kind: input, shape index: {}]   ;;  %s2098_s4 = inlined_call_operand.vmem [shape: f32[207,768], index: 4, kind: input, shape index: {}]   ;;  %s2099_s0 = inlined_call_operand.vmem [shape: f32[2,10], index: 0, kind: input, shape index: {}]   ;;  %s2100_s1 = inlined_call_operand.vmem [shape: f32[2,207], index: 1, kind: input, shape index: {}]   ;;  %s2101_s5 = inlined_call_operand.vmem [shape: f32[256,24], index: 5, kind: input, shape index: {}]   ;;  %s2102_s2 = inlined_call_operand.vmem [shape: f32[1,768], index: 2, kind: input, shape index: {}]   ;;  %s2103_s6 = inlined_call_operand.vmem [shape: f32[2,768], index: 6, kind: output, shape index: {0}]   ;;  %s2104_s7 = inlined_call_operand.vmem [shape: f32[2,3,24], index: 7, kind: output, shape index: {1}]  }
   0x1   :  { %v34_v0 = vld [vmem:[%s2097_s3 + $0x38] sm:$0x3]  ;;  %v33_v2 = vld [vmem:[%s2097_s3 + $0x30] sm:$0x3]  ;;  %126 = vmatprep.mubr.f32.mxu0 %v1215_v3  ;;  %v28_v5 = vld [vmem:[%s2097_s3 + $0x8] sm:$0xff]  ;;  %vm479_vm3 = vcmask 646144  }
   0x2   :  { %v404_v1 = vld [vmem:[%s2098_s4 + $0x2d8] sm:$0xff]  ;;  %1087 = vmatprep.subr.msk.mxu0 %vm43_vm0, %v34_v0  ;;  %v403_v4 = vld [vmem:[%s2098_s4 + $0x2d0] sm:$0xff]  ;;  %v398_v6 = vld [vmem:[%s2098_s4 + $0x2a8] sm:$0xff]  ;;  %vm882_vm4 = vcmask 188416  }
   0x3   :  { %501 = vmatprep.subr.mxu1 %v404_v1  ;;  %1088 = vmatpush1.msk.msra.mxu0 %vm43_vm0, %v33_v2  ;;  %v27_v7 = vld [vmem:[%s2097_s3] sm:$0xff]  ;;  %v36_v10 = vld [vmem:[%s2097_s3 + $0x48] sm:$0x3]  ;;  %v392_v11 = vld [vmem:[%s2098_s4 + $0x278] sm:$0xff] }
   0x4   :  { %502 = vmatpush1.msra.mxu1 %v403_v4  ;;  %v397_v8 = vld [vmem:[%s2098_s4 + $0x2a0] sm:$0xff]  ;;  %92 = vmatprep.subr.mxu0 %v28_v5  ;;  %v391_v13 = vld [vmem:[%s2098_s4 + $0x270] sm:$0xff]  ;;  %v30_v14 = vld [vmem:[%s2097_s3 + $0x18] sm:$0xff] }
   0x5   :  { %v26_v9 = vld [vmem:[%s2099_s0] sm:$0x3]  ;;  %503 = vmatprep.subr.mxu1 %v398_v6  ;;  %93 = vmatpush1.msra.mxu0 %v27_v7  ;;  %v386_v15 = vld [vmem:[%s2098_s4 + $0x248] sm:$0xff]  ;;  %v29_v16 = vld [vmem:[%s2097_s3 + $0x10] sm:$0xff] }
   0x6   :  { %v35_v12 = vld [vmem:[%s2097_s3 + $0x40] sm:$0x3]  ;;  %504 = vmatpush1.msra.mxu1 %v397_v8  ;;  %1089 = vmatmul.mubr.msk.f32.vlgmr.msra.gmra.mxu0 %vm39_vm1, %v26_v9  ;;  %v38_v18 = vld [vmem:[%s2097_s3 + $0x58] sm:$0x3]  ;;  %v379_v20 = vld [vmem:[%s2098_s4 + $0x210] sm:$0xff] }
   0x7   :  { %1090 = vmatprep.subr.msk.mxu0 %vm43_vm0, %v36_v10  ;;  %505 = vmatprep.subr.mxu1 %v392_v11  ;;  %v385_v17 = vld [vmem:[%s2098_s4 + $0x240] sm:$0xff]  ;;  %v380_v19 = vld [vmem:[%s2098_s4 + $0x218] sm:$0xff]  ;;  %v37_v21 = vld [vmem:[%s2097_s3 + $0x50] sm:$0x3] }
   0x8   :  { %1091 = vmatpush1.msk.msra.mxu0 %vm43_vm0, %v35_v12  ;;  %506 = vmatpush1.msra.mxu1 %v391_v13  ;;  %v374_v22 = vld [vmem:[%s2098_s4 + $0x1e8] sm:$0xff]  ;;  %v373_v24 = vld [vmem:[%s2098_s4 + $0x1e0] sm:$0xff]  ;;  %v368_v26 = vld [vmem:[%s2098_s4 + $0x1b8] sm:$0xff] }
   0x9   :  { %163 = vmatprep.subr.mxu0 %v30_v14  ;;  %507 = vmatprep.subr.mxu1 %v386_v15  ;;  %v32_v23 = vld [vmem:[%s2097_s3 + $0x28] sm:$0xff]  ;;  %v31_v25 = vld [vmem:[%s2097_s3 + $0x20] sm:$0xff]  ;;  %v367_v28 = vld [vmem:[%s2098_s4 + $0x1b0] sm:$0xff] }
   0xa   :  { %164 = vmatpush1.msra.mxu0 %v29_v16  ;;  %508 = vmatpush1.msra.mxu1 %v385_v17  ;;  %v406_v27 = vld [vmem:[%s2098_s4 + $0x2e8] sm:$0xff]  ;;  %v405_v29 = vld [vmem:[%s2098_s4 + $0x2e0] sm:$0xff]  ;;  %v400_v31 = vld [vmem:[%s2098_s4 + $0x2b8] sm:$0xff] }
   0xb   :  { %197 = vmatprep.mubr.f32.mxu0 %v1215_v3  ;;  %1093 = vmatprep.subr.msk.mxu0 %vm43_vm0, %v38_v18  ;;  %v362_v30 = vld [vmem:[%s2098_s4 + $0x188] sm:$0xff]  ;;  %v361_v32 = vld [vmem:[%s2098_s4 + $0x180] sm:$0xff]  ;;  %v399_v33 = vld [vmem:[%s2098_s4 + $0x2b0] sm:$0xff] }
   0xc   :  { %509 = vmatprep.subr.mxu1 %v380_v19  ;;  %1092 = vmatmul.mubr.msk.f32.vlgmr.msra.gmra.mxu0 %vm39_vm1, %v26_v9  ;;  %v356_v34 = vld [vmem:[%s2098_s4 + $0x158] sm:$0xff]  ;;  %v394_v35 = vld [vmem:[%s2098_s4 + $0x288] sm:$0xff]  ;;  %v355_v36 = vld [vmem:[%s2098_s4 + $0x150] sm:$0xff] }
   0xd   :  { %510 = vmatpush1.msra.mxu1 %v379_v20  ;;  %1094 = vmatpush1.msk.msra.mxu0 %vm43_vm0, %v37_v21  ;;  %v393_v37 = vld [vmem:[%s2098_s4 + $0x280] sm:$0xff]  ;;  %v350_v38 = vld [vmem:[%s2098_s4 + $0x128] sm:$0xff]  ;;  %v388_v39 = vld [vmem:[%s2098_s4 + $0x258] sm:$0xff] }
   0xe   :  { %511 = vmatprep.subr.mxu1 %v374_v22  ;;  %234 = vmatprep.subr.mxu0 %v32_v23  ;;  %v349_v40 = vld [vmem:[%s2098_s4 + $0x120] sm:$0xff]  ;;  %v387_v41 = vld [vmem:[%s2098_s4 + $0x250] sm:$0xff]  ;;  %v344_v42 = vld [vmem:[%s2098_s4 + $0xf8] sm:$0xff] }
   0xf   :  { %512 = vmatpush1.msra.mxu1 %v373_v24  ;;  %235 = vmatpush1.msra.mxu0 %v31_v25  ;;  %v382_v43 = vld [vmem:[%s2098_s4 + $0x228] sm:$0xff]  ;;  %v343_v44 = vld [vmem:[%s2098_s4 + $0xf0] sm:$0xff]  ;;  %v381_v45 = vld [vmem:[%s2098_s4 + $0x220] sm:$0xff] }
  0x10   :  { %268 = vmatprep.mubr.f32.mxu0 %v1215_v3  ;;  %513 = vmatprep.subr.mxu1 %v368_v26  ;;  %v338_v46 = vld [vmem:[%s2098_s4 + $0xc8] sm:$0xff]  ;;  %v376_v47 = vld [vmem:[%s2098_s4 + $0x1f8] sm:$0xff]  ;;  %v337_v48 = vld [vmem:[%s2098_s4 + $0xc0] sm:$0xff] }
  0x11   :  { %572 = vmatprep.subr.mxu0 %v406_v27  ;;  %1095 = vmatmul.mubr.msk.f32.vlgmr.msra.gmra.mxu0 %vm39_vm1, %v26_v9  ;;  %v375_v49 = vld [vmem:[%s2098_s4 + $0x1f0] sm:$0xff]  ;;  %v332_v50 = vld [vmem:[%s2098_s4 + $0x98] sm:$0xff]  ;;  %v370_v51 = vld [vmem:[%s2098_s4 + $0x1c8] sm:$0xff] }
  0x12   :  { %514 = vmatpush1.msra.mxu1 %v367_v28  ;;  %573 = vmatpush1.msra.mxu0 %v405_v29  ;;  %v331_v52 = vld [vmem:[%s2098_s4 + $0x90] sm:$0xff]  ;;  %v369_v53 = vld [vmem:[%s2098_s4 + $0x1c0] sm:$0xff]  ;;  %v326_v54 = vld [vmem:[%s2098_s4 + $0x68] sm:$0xff] }
  0x13   :  { %515 = vmatprep.subr.mxu1 %v362_v30  ;;  %574 = vmatprep.subr.mxu0 %v400_v31  ;;  %v364_v55 = vld [vmem:[%s2098_s4 + $0x198] sm:$0xff]  ;;  %v325_v56 = vld [vmem:[%s2098_s4 + $0x60] sm:$0xff]  ;;  %v363_v57 = vld [vmem:[%s2098_s4 + $0x190] sm:$0xff] }
  0x14   :  { %516 = vmatpush1.msra.mxu1 %v361_v32  ;;  %575 = vmatpush1.msra.mxu0 %v399_v33  ;;  %v320_v58 = vld [vmem:[%s2098_s4 + $0x38] sm:$0xff]  ;;  %v358_v59 = vld [vmem:[%s2098_s4 + $0x168] sm:$0xff]  ;;  %v319_v60 = vld [vmem:[%s2098_s4 + $0x30] sm:$0xff] }
  0x15   :  { %517 = vmatprep.subr.mxu1 %v356_v34  ;;  %576 = vmatprep.subr.mxu0 %v394_v35  ;;  %v357_v61 = vld [vmem:[%s2098_s4 + $0x160] sm:$0xff]  ;;  %v314_v62 = vld [vmem:[%s2098_s4 + $0x8] sm:$0xff]  ;;  %v352_v63 = vld [vmem:[%s2098_s4 + $0x138] sm:$0xff] }
  0x16   :  { %518 = vmatpush1.msra.mxu1 %v355_v36  ;;  %577 = vmatpush1.msra.mxu0 %v393_v37  ;;  %v313_v0 = vld [vmem:[%s2098_s4] sm:$0xff]  ;;  %v351_v1 = vld [vmem:[%s2098_s4 + $0x130] sm:$0xff]  ;;  %v464_v2 = vld [vmem:[%s2098_s4 + $0x4b8] sm:$0x7f] }
  0x17   :  { %519 = vmatprep.subr.mxu1 %v350_v38  ;;  %578 = vmatprep.subr.mxu0 %v388_v39  ;;  %v346_v3 = vld [vmem:[%s2098_s4 + $0x108] sm:$0xff]  ;;  %v463_v4 = vld [vmem:[%s2098_s4 + $0x4b0] sm:$0x7f]  ;;  %v345_v5 = vld [vmem:[%s2098_s4 + $0x100] sm:$0xff] }
  0x18   :  { %520 = vmatpush1.msra.mxu1 %v349_v40  ;;  %579 = vmatpush1.msra.mxu0 %v387_v41  ;;  %v458_v6 = vld [vmem:[%s2098_s4 + $0x488] sm:$0xff]  ;;  %v340_v7 = vld [vmem:[%s2098_s4 + $0xd8] sm:$0xff]  ;;  %v457_v8 = vld [vmem:[%s2098_s4 + $0x480] sm:$0xff] }
  0x19   :  { %521 = vmatprep.subr.mxu1 %v344_v42  ;;  %580 = vmatprep.subr.mxu0 %v382_v43  ;;  %v339_v9 = vld [vmem:[%s2098_s4 + $0xd0] sm:$0xff]  ;;  %v452_v10 = vld [vmem:[%s2098_s4 + $0x458] sm:$0xff]  ;;  %v334_v11 = vld [vmem:[%s2098_s4 + $0xa8] sm:$0xff] }
  0x1a   :  { %522 = vmatpush1.msra.mxu1 %v343_v44  ;;  %581 = vmatpush1.msra.mxu0 %v381_v45  ;;  %v451_v12 = vld [vmem:[%s2098_s4 + $0x450] sm:$0xff]  ;;  %v333_v13 = vld [vmem:[%s2098_s4 + $0xa0] sm:$0xff]  ;;  %v446_v14 = vld [vmem:[%s2098_s4 + $0x428] sm:$0xff] }
  0x1b   :  { %523 = vmatprep.subr.mxu1 %v338_v46  ;;  %582 = vmatprep.subr.mxu0 %v376_v47  ;;  %v328_v15 = vld [vmem:[%s2098_s4 + $0x78] sm:$0xff]  ;;  %v445_v16 = vld [vmem:[%s2098_s4 + $0x420] sm:$0xff]  ;;  %v327_v17 = vld [vmem:[%s2098_s4 + $0x70] sm:$0xff] }
  0x1c   :  { %524 = vmatpush1.msra.mxu1 %v337_v48  ;;  %583 = vmatpush1.msra.mxu0 %v375_v49  ;;  %v440_v18 = vld [vmem:[%s2098_s4 + $0x3f8] sm:$0xff]  ;;  %v322_v19 = vld [vmem:[%s2098_s4 + $0x48] sm:$0xff]  ;;  %v439_v20 = vld [vmem:[%s2098_s4 + $0x3f0] sm:$0xff] }
  0x1d   :  { %525 = vmatprep.subr.mxu1 %v332_v50  ;;  %584 = vmatprep.subr.mxu0 %v370_v51  ;;  %v321_v21 = vld [vmem:[%s2098_s4 + $0x40] sm:$0xff]  ;;  %v434_v22 = vld [vmem:[%s2098_s4 + $0x3c8] sm:$0xff]  ;;  %v316_v23 = vld [vmem:[%s2098_s4 + $0x18] sm:$0xff] }
  0x1e   :  { %526 = vmatpush1.msra.mxu1 %v331_v52  ;;  %585 = vmatpush1.msra.mxu0 %v369_v53  ;;  %v433_v24 = vld [vmem:[%s2098_s4 + $0x3c0] sm:$0xff]  ;;  %v315_v25 = vld [vmem:[%s2098_s4 + $0x10] sm:$0xff]  ;;  %v428_v26 = vld [vmem:[%s2098_s4 + $0x398] sm:$0xff] }
  0x1f   :  { %527 = vmatprep.subr.mxu1 %v326_v54  ;;  %586 = vmatprep.subr.mxu0 %v364_v55  ;;  %v466_v27 = vld [vmem:[%s2098_s4 + $0x4c8] sm:$0x7f]  ;;  %v427_v28 = vld [vmem:[%s2098_s4 + $0x390] sm:$0xff]  ;;  %v465_v29 = vld [vmem:[%s2098_s4 + $0x4c0] sm:$0x7f] }
  0x20   :  { %528 = vmatpush1.msra.mxu1 %v325_v56  ;;  %587 = vmatpush1.msra.mxu0 %v363_v57  ;;  %v422_v30 = vld [vmem:[%s2098_s4 + $0x368] sm:$0xff]  ;;  %v460_v31 = vld [vmem:[%s2098_s4 + $0x498] sm:$0xff]  ;;  %v421_v32 = vld [vmem:[%s2098_s4 + $0x360] sm:$0xff] }
  0x21   :  { %529 = vmatprep.subr.mxu1 %v320_v58  ;;  %588 = vmatprep.subr.mxu0 %v358_v59  ;;  %v459_v33 = vld [vmem:[%s2098_s4 + $0x490] sm:$0xff]  ;;  %v416_v34 = vld [vmem:[%s2098_s4 + $0x338] sm:$0xff]  ;;  %v1567_v35 = vld.sshfl [vmem:[%s2100_s1] sm:$0x33 pattern:$0x76325410] }
  0x22   :  { %530 = vmatpush1.msra.mxu1 %v319_v60  ;;  %589 = vmatpush1.msra.mxu0 %v357_v61  ;;  %v454_v36 = vld [vmem:[%s2098_s4 + $0x468] sm:$0xff]  ;;  %v415_v37 = vld [vmem:[%s2098_s4 + $0x330] sm:$0xff]  ;;  %v453_v38 = vld [vmem:[%s2098_s4 + $0x460] sm:$0xff]  ;;  %v1590_v42 = vcombine.high %v1567_v35, %v1567_v35 }
  0x23   :  { %531 = vmatprep.subr.mxu1 %v314_v62  ;;  %590 = vmatprep.subr.mxu0 %v352_v63  ;;  %v410_v39 = vld [vmem:[%s2098_s4 + $0x308] sm:$0xff]  ;;  %v448_v40 = vld [vmem:[%s2098_s4 + $0x438] sm:$0xff]  ;;  %v409_v41 = vld [vmem:[%s2098_s4 + $0x300] sm:$0xff] }
  0x24   :  { %532 = vmatpush1.msra.mxu1 %v313_v0  ;;  %591 = vmatpush1.msra.mxu0 %v351_v1  ;;  %v447_v43 = vld [vmem:[%s2098_s4 + $0x430] sm:$0xff]  ;;  %v442_v44 = vld [vmem:[%s2098_s4 + $0x408] sm:$0xff]  ;;  %v408_v45 = vld [vmem:[%s2098_s4 + $0x2f8] sm:$0xff] }
  0x25   :  { %1097 = vmatprep.subr.msk.mxu1 %vm482_vm2, %v464_v2  ;;  %592 = vmatprep.subr.mxu0 %v346_v3  ;;  %v441_v46 = vld [vmem:[%s2098_s4 + $0x400] sm:$0xff]  ;;  %v407_v47 = vld [vmem:[%s2098_s4 + $0x2f0] sm:$0xff]  ;;  %v436_v48 = vld [vmem:[%s2098_s4 + $0x3d8] sm:$0xff] }
  0x26   :  { %1098 = vmatpush2.msk.msra.mxu1 %vm482_vm2, %v463_v4  ;;  %593 = vmatpush1.msra.mxu0 %v345_v5  ;;  %v402_v49 = vld [vmem:[%s2098_s4 + $0x2c8] sm:$0xff]  ;;  %v435_v50 = vld [vmem:[%s2098_s4 + $0x3d0] sm:$0xff]  ;;  %v401_v51 = vld [vmem:[%s2098_s4 + $0x2c0] sm:$0xff] }
  0x27   :  { %547 = vmatprep.subr.mxu1 %v458_v6  ;;  %594 = vmatprep.subr.mxu0 %v340_v7  ;;  %v430_v52 = vld [vmem:[%s2098_s4 + $0x3a8] sm:$0xff]  ;;  %v396_v53 = vld [vmem:[%s2098_s4 + $0x298] sm:$0xff]  ;;  %v429_v54 = vld [vmem:[%s2098_s4 + $0x3a0] sm:$0xff] }
  0x28   :  { %548 = vmatpush2.msra.mxu1 %v457_v8  ;;  %595 = vmatpush1.msra.mxu0 %v339_v9  ;;  %v395_v55 = vld [vmem:[%s2098_s4 + $0x290] sm:$0xff]  ;;  %v424_v56 = vld [vmem:[%s2098_s4 + $0x378] sm:$0xff]  ;;  %v390_v57 = vld [vmem:[%s2098_s4 + $0x268] sm:$0xff] }
  0x29   :  { %549 = vmatprep.subr.mxu1 %v452_v10  ;;  %596 = vmatprep.subr.mxu0 %v334_v11  ;;  %v423_v58 = vld [vmem:[%s2098_s4 + $0x370] sm:$0xff]  ;;  %v389_v59 = vld [vmem:[%s2098_s4 + $0x260] sm:$0xff]  ;;  %v418_v60 = vld [vmem:[%s2098_s4 + $0x348] sm:$0xff] }
  0x2a   :  { %550 = vmatpush2.msra.mxu1 %v451_v12  ;;  %597 = vmatpush1.msra.mxu0 %v333_v13  ;;  %v384_v61 = vld [vmem:[%s2098_s4 + $0x238] sm:$0xff]  ;;  %v417_v62 = vld [vmem:[%s2098_s4 + $0x340] sm:$0xff]  ;;  %v383_v63 = vld [vmem:[%s2098_s4 + $0x230] sm:$0xff] }
  0x2b   :  { %551 = vmatprep.subr.mxu1 %v446_v14  ;;  %598 = vmatprep.subr.mxu0 %v328_v15  ;;  %v412_v0 = vld [vmem:[%s2098_s4 + $0x318] sm:$0xff]  ;;  %v378_v1 = vld [vmem:[%s2098_s4 + $0x208] sm:$0xff]  ;;  %v411_v2 = vld [vmem:[%s2098_s4 + $0x310] sm:$0xff] }
  0x2c   :  { %552 = vmatpush2.msra.mxu1 %v445_v16  ;;  %599 = vmatpush1.msra.mxu0 %v327_v17  ;;  %v377_v3 = vld [vmem:[%s2098_s4 + $0x200] sm:$0xff]  ;;  %v372_v4 = vld [vmem:[%s2098_s4 + $0x1d8] sm:$0xff]  ;;  %v371_v5 = vld [vmem:[%s2098_s4 + $0x1d0] sm:$0xff] }
  0x2d   :  { %553 = vmatprep.subr.mxu1 %v440_v18  ;;  %600 = vmatprep.subr.mxu0 %v322_v19  ;;  %v366_v6 = vld [vmem:[%s2098_s4 + $0x1a8] sm:$0xff]  ;;  %v1684_v7 = vld [vmem:[%s2101_s5 + $0xf8] sm:$0xff]  ;;  %v365_v8 = vld [vmem:[%s2098_s4 + $0x1a0] sm:$0xff] }
  0x2e   :  { %554 = vmatpush2.msra.mxu1 %v439_v20  ;;  %601 = vmatpush1.msra.mxu0 %v321_v21  ;;  %v1693_v9 = vld [vmem:[%s2101_s5 + $0x78] sm:$0xff]  ;;  %v1703_v11 = vld [vmem:[%s2101_s5 + $0xf0] sm:$0xff]  ;;  %v354_v14 = vld [vmem:[%s2098_s4 + $0x148] sm:$0xff] }
  0x2f   :  { %555 = vmatprep.subr.mxu1 %v434_v22  ;;  %602 = vmatprep.subr.mxu0 %v316_v23  ;;  %v360_v10 = vld [vmem:[%s2098_s4 + $0x178] sm:$0xff]  ;;  %v359_v12 = vld [vmem:[%s2098_s4 + $0x170] sm:$0xff]  ;;  %v1721_v15 = vld [vmem:[%s2101_s5 + $0xe8] sm:$0xff] }
  0x30   :  { %556 = vmatpush2.msra.mxu1 %v433_v24  ;;  %603 = vmatpush1.msra.mxu0 %v315_v25  ;;  %v1712_v13 = vld [vmem:[%s2101_s5 + $0x70] sm:$0xff]  ;;  %v353_v16 = vld [vmem:[%s2098_s4 + $0x140] sm:$0xff]  ;;  %v1730_v17 = vld [vmem:[%s2101_s5 + $0x68] sm:$0xff] }
  0x31   :  { %557 = vmatprep.subr.mxu1 %v428_v26  ;;  %1100 = vmatprep.subr.msk.mxu0 %vm482_vm2, %v466_v27  ;;  %v348_v18 = vld [vmem:[%s2098_s4 + $0x118] sm:$0xff]  ;;  %v1739_v19 = vld [vmem:[%s2101_s5 + $0xe0] sm:$0xff]  ;;  %v347_v20 = vld [vmem:[%s2098_s4 + $0x110] sm:$0xff] }
  0x32   :  { %558 = vmatpush2.msra.mxu1 %v427_v28  ;;  %1101 = vmatpush2.msk.msra.mxu0 %vm482_vm2, %v465_v29  ;;  %v1748_v21 = vld [vmem:[%s2101_s5 + $0x60] sm:$0xff]  ;;  %v342_v22 = vld [vmem:[%s2098_s4 + $0xe8] sm:$0xff]  ;;  %v1757_v23 = vld [vmem:[%s2101_s5 + $0xd8] sm:$0xff] }
  0x33   :  { %559 = vmatprep.subr.mxu1 %v422_v30  ;;  %618 = vmatprep.subr.mxu0 %v460_v31  ;;  %v341_v24 = vld [vmem:[%s2098_s4 + $0xe0] sm:$0xff]  ;;  %v1766_v25 = vld [vmem:[%s2101_s5 + $0x58] sm:$0xff]  ;;  %v1775_v27 = vld [vmem:[%s2101_s5 + $0xd0] sm:$0xff] }
  0x34   :  { %560 = vmatpush2.msra.mxu1 %v421_v32  ;;  %619 = vmatpush2.msra.mxu0 %v459_v33  ;;  %v336_v26 = vld [vmem:[%s2098_s4 + $0xb8] sm:$0xff]  ;;  %v335_v28 = vld [vmem:[%s2098_s4 + $0xb0] sm:$0xff]  ;;  %v330_v30 = vld [vmem:[%s2098_s4 + $0x88] sm:$0xff] }
  0x35   :  { %561 = vmatprep.subr.mxu1 %v416_v34  ;;  %620 = vmatprep.subr.mxu0 %v454_v36  ;;  %v1784_v29 = vld [vmem:[%s2101_s5 + $0x50] sm:$0xff]  ;;  %v1793_v31 = vld [vmem:[%s2101_s5 + $0xc8] sm:$0xff]  ;;  %v329_v32 = vld [vmem:[%s2098_s4 + $0x80] sm:$0xff] }
  0x36   :  { %562 = vmatpush2.msra.mxu1 %v415_v37  ;;  %621 = vmatpush2.msra.mxu0 %v453_v38  ;;  %v1802_v33 = vld [vmem:[%s2101_s5 + $0x48] sm:$0xff]  ;;  %v324_v34 = vld [vmem:[%s2098_s4 + $0x58] sm:$0xff]  ;;  %v1811_v36 = vld [vmem:[%s2101_s5 + $0xc0] sm:$0xff] }
  0x37   :  { %563 = vmatprep.subr.mxu1 %v410_v39  ;;  %622 = vmatprep.subr.mxu0 %v448_v40  ;;  %v323_v37 = vld [vmem:[%s2098_s4 + $0x50] sm:$0xff]  ;;  %v1820_v38 = vld [vmem:[%s2101_s5 + $0x40] sm:$0xff]  ;;  %v318_v39 = vld [vmem:[%s2098_s4 + $0x28] sm:$0xff] }
  0x38   :  { %564 = vmatpush2.msra.mxu1 %v409_v41  ;;  %1099 = vmatprep.mubr.msk.f32.mxu1 %vm479_vm3, %v1590_v42  ;;  %v1829_v40 = vld [vmem:[%s2101_s5 + $0xb8] sm:$0xff]  ;;  %v317_v41 = vld [vmem:[%s2098_s4 + $0x20] sm:$0xff] }
  0x39   :  { %623 = vmatpush2.msra.mxu0 %v447_v43  ;;  %566 = vmatmul.mubr.f32.vlgmr.msra.gmra.mxu1 %v1567_v35  ;;  %v468_v43 = vld [vmem:[%s2098_s4 + $0x4d8] sm:$0x7f] }
  0x3a   :  { %624 = vmatprep.subr.mxu0 %v442_v44  ;;  %643 = vmatprep.subr.mxu1 %v408_v45  ;;  %v1847_v44 = vld [vmem:[%s2101_s5 + $0xb0] sm:$0xff] }
  0x3b   :  { %625 = vmatpush2.msra.mxu0 %v441_v46  ;;  %644 = vmatpush1.msra.mxu1 %v407_v47  ;;  %v467_v45 = vld [vmem:[%s2098_s4 + $0x4d0] sm:$0x7f]  ;;  %v462_v47 = vld [vmem:[%s2098_s4 + $0x4a8] sm:$0xff] }
  0x3c   :  { %626 = vmatprep.subr.mxu0 %v436_v48  ;;  %645 = vmatprep.subr.mxu1 %v402_v49  ;;  %v1856_v46 = vld [vmem:[%s2101_s5 + $0x30] sm:$0xff]  ;;  %v1865_v48 = vld [vmem:[%s2101_s5 + $0xa8] sm:$0xff]  ;;  %v461_v49 = vld [vmem:[%s2098_s4 + $0x4a0] sm:$0xff] }
  0x3d   :  { %627 = vmatpush2.msra.mxu0 %v435_v50  ;;  %646 = vmatpush1.msra.mxu1 %v401_v51  ;;  %v1875_v50 = vld [vmem:[%s2101_s5 + $0x28] sm:$0xff]  ;;  %v456_v51 = vld [vmem:[%s2098_s4 + $0x478] sm:$0xff] }
  0x3e   :  { %628 = vmatprep.subr.mxu0 %v430_v52  ;;  %647 = vmatprep.subr.mxu1 %v396_v53  ;;  %v1885_v52 = vld [vmem:[%s2101_s5 + $0xa0] sm:$0xff]  ;;  %v455_v53 = vld [vmem:[%s2098_s4 + $0x470] sm:$0xff] }
  0x3f   :  { %629 = vmatpush2.msra.mxu0 %v429_v54  ;;  %648 = vmatpush1.msra.mxu1 %v395_v55  ;;  %v1894_v54 = vld [vmem:[%s2101_s5 + $0x20] sm:$0xff]  ;;  %v450_v55 = vld [vmem:[%s2098_s4 + $0x448] sm:$0xff] }
  0x40   :  { %630 = vmatprep.subr.mxu0 %v424_v56  ;;  %649 = vmatprep.subr.mxu1 %v390_v57  ;;  %v1903_v56 = vld [vmem:[%s2101_s5 + $0x98] sm:$0xff]  ;;  %v449_v57 = vld [vmem:[%s2098_s4 + $0x440] sm:$0xff] }
  0x41   :  { %631 = vmatpush2.msra.mxu0 %v423_v58  ;;  %650 = vmatpush1.msra.mxu1 %v389_v59  ;;  %v1912_v58 = vld [vmem:[%s2101_s5 + $0x18] sm:$0xff] }
  0x42   :  { %632 = vmatprep.subr.mxu0 %v418_v60  ;;  %651 = vmatprep.subr.mxu1 %v384_v61  ;;  %v444_v59 = vld [vmem:[%s2098_s4 + $0x418] sm:$0xff]  ;;  %v1921_v60 = vld [vmem:[%s2101_s5 + $0x90] sm:$0xff] }
  0x43   :  { %633 = vmatpush2.msra.mxu0 %v417_v62  ;;  %652 = vmatpush1.msra.mxu1 %v383_v63  ;;  %v443_v61 = vld [vmem:[%s2098_s4 + $0x410] sm:$0xff]  ;;  %v438_v63 = vld [vmem:[%s2098_s4 + $0x3e8] sm:$0xff] }
  0x44   :  { %634 = vmatprep.subr.mxu0 %v412_v0  ;;  %653 = vmatprep.subr.mxu1 %v378_v1  ;;  %v1930_v62 = vld [vmem:[%s2101_s5 + $0x10] sm:$0xff]  ;;  %v1939_v0 = vld [vmem:[%s2101_s5 + $0x88] sm:$0xff]  ;;  %v437_v1 = vld [vmem:[%s2098_s4 + $0x3e0] sm:$0xff] }
  0x45   :  { %635 = vmatpush2.msra.mxu0 %v411_v2  ;;  %1102 = vmatprep.mubr.msk.f32.mxu0 %vm479_vm3, %v1590_v42  ;;  %v1948_v2 = vld [vmem:[%s2101_s5 + $0x8] sm:$0xff] }
  0x46   :  { %654 = vmatpush1.msra.mxu1 %v377_v3  ;;  %637 = vmatmul.mubr.f32.vlgmr.msra.gmra.mxu0 %v1567_v35  ;;  %v432_v3 = vld [vmem:[%s2098_s4 + $0x3b8] sm:$0xff] }
  0x47   :  { %655 = vmatprep.subr.mxu1 %v372_v4  ;;  %1105 = vmatprep.mubr.msk.f32.mxu1 %vm479_vm3, %v1590_v42  ;;  %v1838_v42 = vld [vmem:[%s2101_s5 + $0x38] sm:$0xff]  ;;  %v1957_v4 = vld [vmem:[%s2101_s5 + $0x80] sm:$0xff] }
  0x48   :  { %656 = vmatpush1.msra.mxu1 %v371_v5  ;;  %1107 = vmatprep.subr.mxu0 %v1684_v7  ;;  %v431_v5 = vld [vmem:[%s2098_s4 + $0x3b0] sm:$0xff] }
  0x49   :  { %657 = vmatprep.subr.mxu1 %v366_v6  ;;  %1108 = vmatpush3.msra.mxu0 %v1693_v9  ;;  %v1966_v6 = vld [vmem:[%s2101_s5] sm:$0xff] }
  0x4a   :  { %658 = vmatpush1.msra.mxu1 %v365_v8  ;;  %1109 = vmatprep.subr.mxu0 %v1703_v11  ;;  %v426_v8 = vld [vmem:[%s2098_s4 + $0x388] sm:$0xff] }
  0x4b   :  { %659 = vmatprep.subr.mxu1 %v360_v10  ;;  %1110 = vmatpush3.msra.mxu0 %v1712_v13  ;;  %v425_v10 = vld [vmem:[%s2098_s4 + $0x380] sm:$0xff] }
  0x4c   :  { %660 = vmatpush1.msra.mxu1 %v359_v12  ;;  %1111 = vmatprep.subr.mxu0 %v1721_v15  ;;  %v420_v12 = vld [vmem:[%s2098_s4 + $0x358] sm:$0xff] }
  0x4d   :  { %661 = vmatprep.subr.mxu1 %v354_v14  ;;  %1112 = vmatpush3.msra.mxu0 %v1730_v17  ;;  %v419_v14 = vld [vmem:[%s2098_s4 + $0x350] sm:$0xff] }
  0x4e   :  { %662 = vmatpush1.msra.mxu1 %v353_v16  ;;  %1113 = vmatprep.subr.mxu0 %v1739_v19  ;;  %v414_v16 = vld [vmem:[%s2098_s4 + $0x328] sm:$0xff] }
  0x4f   :  { %663 = vmatprep.subr.mxu1 %v348_v18  ;;  %1114 = vmatpush3.msra.mxu0 %v1748_v21  ;;  %v413_v18 = vld [vmem:[%s2098_s4 + $0x320] sm:$0xff] }
  0x50   :  { %664 = vmatpush1.msra.mxu1 %v347_v20  ;;  %1115 = vmatprep.subr.mxu0 %v1757_v23 }
  0x51   :  { %665 = vmatprep.subr.mxu1 %v342_v22  ;;  %1116 = vmatpush3.msra.mxu0 %v1766_v25 }
  0x52   :  { %666 = vmatpush1.msra.mxu1 %v341_v24  ;;  %1117 = vmatprep.subr.mxu0 %v1775_v27  ;;  %v25_v24 = vld [vmem:[%s2102_s2] sm:$0x3f] }
  0x53   :  { %667 = vmatprep.subr.mxu1 %v336_v26  ;;  %1118 = vmatpush3.msra.mxu0 %v1784_v29 }
  0x54   :  { %668 = vmatpush1.msra.mxu1 %v335_v28  ;;  %1119 = vmatprep.subr.mxu0 %v1793_v31 }
  0x55   :  { %669 = vmatprep.subr.mxu1 %v330_v30  ;;  %1120 = vmatpush3.msra.mxu0 %v1802_v33 }
  0x56   :  { %670 = vmatpush1.msra.mxu1 %v329_v32  ;;  %1121 = vmatprep.subr.mxu0 %v1811_v36 }
  0x57   :  { %671 = vmatprep.subr.mxu1 %v324_v34  ;;  %1122 = vmatpush3.msra.mxu0 %v1820_v38 }
  0x58   :  { %672 = vmatpush1.msra.mxu1 %v323_v37  ;;  %1123 = vmatprep.subr.mxu0 %v1829_v40 }
  0x59   :  { %673 = vmatprep.subr.mxu1 %v318_v39  ;;  %1124 = vmatpush3.msra.mxu0 %v1838_v42 }
  0x5a   :  { %674 = vmatpush1.msra.mxu1 %v317_v41  ;;  %1125 = vmatprep.subr.mxu0 %v1847_v44 }
  0x5b   :  { %1103 = vmatprep.subr.msk.mxu1 %vm482_vm2, %v468_v43  ;;  %1126 = vmatpush3.msra.mxu0 %v1856_v46 }
  0x5c   :  { %1104 = vmatpush2.msk.msra.mxu1 %vm482_vm2, %v467_v45  ;;  %1127 = vmatprep.subr.mxu0 %v1865_v48 }
  0x5d   :  { %689 = vmatprep.subr.mxu1 %v462_v47  ;;  %1128 = vmatpush3.msra.mxu0 %v1875_v50 }
  0x5e   :  { %690 = vmatpush2.msra.mxu1 %v461_v49  ;;  %1129 = vmatprep.subr.mxu0 %v1885_v52 }
  0x5f   :  { %691 = vmatprep.subr.mxu1 %v456_v51  ;;  %1130 = vmatpush3.msra.mxu0 %v1894_v54 }
  0x60   :  { %692 = vmatpush2.msra.mxu1 %v455_v53  ;;  %1131 = vmatprep.subr.mxu0 %v1903_v56 }
  0x61   :  { %693 = vmatprep.subr.mxu1 %v450_v55  ;;  %1132 = vmatpush3.msra.mxu0 %v1912_v58 }
  0x62   :  { %694 = vmatpush2.msra.mxu1 %v449_v57  ;;  %1133 = vmatprep.subr.mxu0 %v1921_v60 }
  0x63   :  { %695 = vmatprep.subr.mxu1 %v444_v59  ;;  %1134 = vmatpush3.msra.mxu0 %v1930_v62 }
  0x64   :  { %696 = vmatpush2.msra.mxu1 %v443_v61  ;;  %1135 = vmatprep.subr.mxu0 %v1939_v0 }
  0x65   :  { %697 = vmatprep.subr.mxu1 %v438_v63  ;;  %1136 = vmatpush3.msra.mxu0 %v1948_v2 }
  0x66   :  { %698 = vmatpush2.msra.mxu1 %v437_v1  ;;  %1137 = vmatprep.subr.mxu0 %v1957_v4 }
  0x67   :  { %699 = vmatprep.subr.mxu1 %v432_v3  ;;  %1138 = vmatpush3.msra.mxu0 %v1966_v6 }
  0x68   :  { %700 = vmatpush2.msra.mxu1 %v431_v5  ;;  %1142 = vmatprep.subr.mxu0 %v1684_v7 }
  0x69   :  { %701 = vmatprep.subr.mxu1 %v426_v8 }
  0x6a   :  { %702 = vmatpush2.msra.mxu1 %v425_v10 }
  0x6b   :  { %703 = vmatprep.subr.mxu1 %v420_v12 }
  0x6c   :  { %704 = vmatpush2.msra.mxu1 %v419_v14 }
  0x6d   :  { %705 = vmatprep.subr.mxu1 %v414_v16 }
  0x6e   :  { %706 = vmatpush2.msra.mxu1 %v413_v18 }
  0x6f   :  { %708 = vmatmul.mubr.f32.vlgmr.msra.gmra.mxu1 %v1567_v35  ;;  %1177 = vmatprep.subr.mxu1 %v1684_v7  ;;  %v276_v35 = vlaneseq }
  0x70   :  { %1178 = vmatpush3.msra.mxu1 %v1693_v9 }
  0x71   :  { %1179 = vmatprep.subr.mxu1 %v1703_v11  ;;  %v2023_v7 = vshrl.u32 %v276_v35, 7 }
  0x72   :  { %1180 = vmatpush3.msra.mxu1 %v1712_v13 }
  0x73   :  { %1181 = vmatprep.subr.mxu1 %v1721_v15  ;;  %v282_v20 = vsub.s32 1, %v2023_v7  ;;  %v278_v22 = vsub.s32 0, %v2023_v7  ;;  %v290_v32 = vsub.s32 3, %v2023_v7  ;;  %v294_v43 = vsub.s32 4, %v2023_v7 }
  0x74   :  { %1182 = vmatpush3.msra.mxu1 %v1730_v17  ;;  %v298_v47 = vsub.s32 5, %v2023_v7 }
  0x75   :  { %1183 = vmatprep.subr.mxu1 %v1739_v19  ;;  %v283_v26 = vrot.slane %v25_v24, %v282_v20  ;;  %v279_v30 = vrot.slane %v25_v24, %v278_v22  ;;  %v291_v41 = vrot.slane %v25_v24, %v290_v32  ;;  %v295_v53 = vrot.slane %v25_v24, %v294_v43 }
  0x76   :  { %1184 = vmatpush3.msra.mxu1 %v1748_v21  ;;  %v299_v55 = vrot.slane %v25_v24, %v298_v47 }
  0x77   :  { %1185 = vmatprep.subr.mxu1 %v1757_v23 }
  0x78   :  { %1186 = vmatpush3.msra.mxu1 %v1766_v25 }
  0x79   :  { %1187 = vmatprep.subr.mxu1 %v1775_v27 }
  0x7a   :  { %1188 = vmatpush3.msra.mxu1 %v1784_v29 }
  0x7b   :  { %1189 = vmatprep.subr.mxu1 %v1793_v31 }
  0x7c   :  { %1190 = vmatpush3.msra.mxu1 %v1802_v33 }
  0x7d   :  { %1191 = vmatprep.subr.mxu1 %v1811_v36 }
  0x7e   :  { %1192 = vmatpush3.msra.mxu1 %v1820_v38 }
  0x7f   :  { %1193 = vmatprep.subr.mxu1 %v1829_v40 }
  0x80   :  { %1194 = vmatpush3.msra.mxu1 %v1838_v42 }
  0x81   :  { %1195 = vmatprep.subr.mxu1 %v1847_v44 }
  0x82   :  { %1196 = vmatpush3.msra.mxu1 %v1856_v46 }
  0x83   :  { %1197 = vmatprep.subr.mxu1 %v1865_v48 }
  0x84   :  { %1198 = vmatpush3.msra.mxu1 %v1875_v50 }
  0x85   :  { %1199 = vmatprep.subr.mxu1 %v1885_v52 }
  0x86   :  { %1200 = vmatpush3.msra.mxu1 %v1894_v54 }
  0x87   :  { %1201 = vmatprep.subr.mxu1 %v1903_v56 }
  0x88   :  { %1202 = vmatpush3.msra.mxu1 %v1912_v58 }
  0x89   :  { %1203 = vmatprep.subr.mxu1 %v1921_v60 }
  0x8a   :  { %1204 = vmatpush3.msra.mxu1 %v1930_v62 }
  0x8b   :  { %1205 = vmatprep.subr.mxu1 %v1939_v0 }
  0x8c   :  { %1206 = vmatpush3.msra.mxu1 %v1948_v2 }
  0x8d   :  { %1207 = vmatprep.subr.mxu1 %v1957_v4 }
  0x8e   :  { %1208 = vmatpush3.msra.mxu1 %v1966_v6 }
  0xc6   :  { %v128_v28 = vpop.f32.mrf.mxu0 }
  0xc7   :  { %v306_v39 = vadd.f32 %v279_v30, %v128_v28 }
  0xc8   :  { %v130_v34 = vpop.f32.mrf.mxu0 }
  0xc9   :  { %v307_v37 = vadd.f32 %v283_v26, %v130_v34 }
  0xcb   :  { %851 = vmatprep.mubr.f32.mxu0 %v307_v37 }
  0xcc   :  { %852 = vmatmul.mubr.f32.vlgmr.msra.gmra.mxu0 %v306_v39  ;;  %v199_v45 = vpop.f32.mrf.mxu0 }
  0xcd   :  { %1143 = vmatpush3.msra.mxu0 %v1693_v9 }
  0xce   :  { %1144 = vmatprep.subr.mxu0 %v1703_v11  ;;  %v201_v49 = vpop.f32.mrf.mxu0 }
  0xcf   :  { %1145 = vmatpush3.msra.mxu0 %v1712_v13  ;;  %v309_v51 = vadd.f32 %v291_v41, %v201_v49  ;;  %v286_v13 = vsub.s32 2, %v2023_v7 }
  0xd0   :  { %1146 = vmatprep.subr.mxu0 %v1721_v15 }
  0xd1   :  { %1147 = vmatpush3.msra.mxu0 %v1730_v17  ;;  %v270_v57 = vpop.f32.mrf.mxu0  ;;  %949 = vmatprep.mubr.f32.mxu0 %v309_v51  ;;  %v287_v15 = vrot.slane %v25_v24, %v286_v13 }
  0xd2   :  { %1148 = vmatprep.subr.mxu0 %v1739_v19  ;;  %v310_v59 = vadd.f32 %v295_v53, %v270_v57 }
  0xd3   :  { %1149 = vmatpush3.msra.mxu0 %v1748_v21  ;;  %v272_v9 = vpop.f32.mrf.mxu0  ;;  %v308_v17 = vadd.f32 %v287_v15, %v199_v45  ;;  %v1216_v21 = vmov 1983009808  }
  0xd4   :  { %1150 = vmatprep.subr.mxu0 %v1757_v23  ;;  %v311_v11 = vadd.f32 %v299_v55, %v272_v9  ;;  %v729_v23 = vunpack.c.l.s4 %v1216_v21 }
  0xd5   :  { %1151 = vmatpush3.msra.mxu0 %v1766_v25 }
  0xd6   :  { %1152 = vmatprep.subr.mxu0 %v1775_v27  ;;  %1046 = vmatprep.mubr.f32.mxu1 %v311_v11 }
  0xd7   :  { %1153 = vmatpush3.msra.mxu0 %v1784_v29  ;;  %1047 = vmatmul.mubr.f32.vlgmr.msra.gmra.mxu1 %v310_v59  ;;  %v730_v29 = vunpack.c.0.s8 %v729_v23 }
  0xd8   :  { %1154 = vmatprep.subr.mxu0 %v1793_v31 }
  0xd9   :  { %1155 = vmatpush3.msra.mxu0 %v1802_v33 }
  0xda   :  { %1156 = vmatprep.subr.mxu0 %v1811_v36 }
  0xdb   :  { %1157 = vmatpush3.msra.mxu0 %v1820_v38 }
  0xdc   :  { %1158 = vmatprep.subr.mxu0 %v1829_v40  ;;  %v733_v40 = vsub.s32 %v730_v29, %v2023_v7 }
  0xdd   :  { %1159 = vmatpush3.msra.mxu0 %v1838_v42 }
  0xde   :  { %1160 = vmatprep.subr.mxu0 %v1847_v44 }
  0xdf   :  { %1161 = vmatpush3.msra.mxu0 %v1856_v46 }
  0xe0   :  { %1162 = vmatprep.subr.mxu0 %v1865_v48 }
  0xe1   :  { %1163 = vmatpush3.msra.mxu0 %v1875_v50 }
  0xe2   :  { %1164 = vmatprep.subr.mxu0 %v1885_v52 }
  0xe3   :  { %1165 = vmatpush3.msra.mxu0 %v1894_v54 }
  0xe4   :  { %1166 = vmatprep.subr.mxu0 %v1903_v56 }
  0xe5   :  { %1167 = vmatpush3.msra.mxu0 %v1912_v58 }
  0xe6   :  { %1168 = vmatprep.subr.mxu0 %v1921_v60 }
  0xe7   :  { %1169 = vmatpush3.msra.mxu0 %v1930_v62  ;;  %v1217_v62 = vmov 1966171168  }
  0xe8   :  { %1170 = vmatprep.subr.mxu0 %v1939_v0  ;;  %v859_v63 = vunpack.c.l.s4 %v1217_v62 }
  0xe9   :  { %1171 = vmatpush3.msra.mxu0 %v1948_v2 }
  0xea   :  { %1172 = vmatprep.subr.mxu0 %v1957_v4  ;;  %v860_v0 = vunpack.c.0.s8 %v859_v63 }
  0xeb   :  { %1173 = vmatpush3.msra.mxu0 %v1966_v6 }
  0xec   :  { %950 = vmatmul.mubr.f32.vlgmr.msra.gmra.mxu0 %v308_v17  ;;  %v863_v2 = vsub.s32 %v860_v0, %v2023_v7 }
  0xf9   :  { %v567_v19 = vpop.f32.mrf.mxu1 }
  0xfa   :  { %v714_v33 = vadd.f32 %v567_v19, %v306_v39 }
  0xfb   :  { %v569_v25 = vpop.f32.mrf.mxu1 }
  0xfc   :  { %v715_v27 = vadd.f32 %v569_v25, %v307_v37 }
  0xfe   :  { %v726_v38 = vcombine.low %v714_v33, %v715_v27 }
 0x100   :  { %v734_v48 = vrot.slane %v726_v38, %v733_v40 }
 0x106   :  { %v638_v31 = vpop.f32.mrf.mxu0 }
 0x107   :  { %v716_v42 = vadd.f32 %v638_v31, %v308_v17 }
 0x108   :  { %v640_v36 = vpop.f32.mrf.mxu0 }
 0x109   :  { %v717_v44 = vadd.f32 %v640_v36, %v309_v51 }
 0x10b   :  { %v727_v46 = vcombine.low %v716_v42, %v717_v44 }
 0x10d   :  { %v741_v50 = vrot.slane %v727_v46, %v733_v40 }
 0x10f   :  { %v742_v52 = vcombine.low %v734_v48, %v741_v50 }
 0x111   :  { %753 = vst [vmem:[%s2103_s6] sm:$0xff] %v742_v52 }
 0x12f   :  { %v709_v54 = vpop.f32.mrf.mxu1 }
 0x130   :  { %v718_v58 = vadd.f32 %v709_v54, %v310_v59 }
 0x131   :  { %v711_v56 = vpop.f32.mrf.mxu1 }
 0x132   :  { %v719_v60 = vadd.f32 %v711_v56, %v311_v11 }
 0x134   :  { %v743_v61 = vcombine.low %v718_v58, %v719_v60 }
 0x136   :  { %1106 = vst.sshfl [vmem:[%s2103_s6 + $0x8] sm:$0x33 pattern:$0x76325410] %v743_v61 }
 0x18c   :  { %v1139_v1 = vpop.f32.mrf.mxu0 }
 0x18e   :  { %v1140_v3 = vpop.f32.mrf.mxu0 }
 0x18f   :  { %v1141_v4 = vadd.f32 %v1140_v3, %v1139_v1 }
 0x191   :  { %v864_v5 = vrot.slane %v1141_v4, %v863_v2 }
 0x193   :  { %v865_v6 = vcombine.high %v864_v5, %v864_v5  ;;  %v872_v8 = vrot.slane %v864_v5, %v863_v2 }
 0x195   :  { %v879_v10 = vrot.slane %v865_v6, %v863_v2  ;;  %883 = vst.msk [vmem:[%s2104_s7] sm:$0x1] %vm882_vm4, %v872_v8 }
 0x197   :  { %884 = vst.msk [vmem:[%s2104_s7 + $0x4] sm:$0x1] %vm882_vm4, %v879_v10  ;;  %v1209_v12 = vpop.f32.mrf.mxu1 }
 0x199   :  { %v1210_v14 = vpop.f32.mrf.mxu1 }
 0x19a   :  { %v1211_v16 = vadd.f32 %v1210_v14, %v1209_v12 }
 0x19c   :  { %v1059_v18 = vrot.slane %v1211_v16, %v863_v2 }
 0x19e   :  { %v1060_v35 = vcombine.high %v1059_v18, %v1059_v18  ;;  %v1067_v7 = vrot.slane %v1059_v18, %v863_v2 }
 0x1a0   :  { %v1074_v20 = vrot.slane %v1060_v35, %v863_v2  ;;  %1077 = vst.msk [vmem:[%s2104_s7 + $0x2] sm:$0x1] %vm882_vm4, %v1067_v7 }
 0x1a2   :  { %1078 = vst.msk [vmem:[%s2104_s7 + $0x6] sm:$0x1] %vm882_vm4, %v1074_v20 }
 0x1ac   :  { %v1174_v22 = vpop.f32.mrf.mxu0 }
 0x1ae   :  { %v1175_v24 = vpop.f32.mrf.mxu0 }
 0x1af   :  { %v1176_v26 = vadd.f32 %v1175_v24, %v1174_v22 }
 0x1b1   :  { %v962_v28 = vrot.slane %v1176_v26, %v863_v2 }
 0x1b3   :  { %v963_v30 = vcombine.high %v962_v28, %v962_v28  ;;  %v970_v32 = vrot.slane %v962_v28, %v863_v2 }
 0x1b5   :  { %v977_v34 = vrot.slane %v963_v30, %v863_v2  ;;  %980 = vst.msk [vmem:[%s2104_s7 + $0x1] sm:$0x1] %vm882_vm4, %v970_v32 }
 0x1b7   :  { %981 = vst.msk [vmem:[%s2104_s7 + $0x5] sm:$0x1] %vm882_vm4, %v977_v34 }

// kernel: smpl_forward.3
= control target key start
LH: loop header
LB: loop body
LE: loop exit
PB: predicated region body
PF: predicated region fallthrough
CT: control target
= control target key end

     0   :  { %v477_v3 = vmov 0.0   ;;  %vm26_vm0 = vcmask 195584   ;;  %v478_v11 = vmov 0   ;;  %v124_v13 = vlaneseq  ;;  %s640_s2 = inlined_call_operand.vmem [shape: f32[24,256], index: 2, kind: input, shape index: {}]   ;;  %s641_s0 = inlined_call_operand.vmem [shape: f32[24,24], index: 0, kind: input, shape index: {}]   ;;  %s642_s1 = inlined_call_operand.vmem [shape: f32[2,3,1], index: 1, kind: input, shape index: {}]   ;;  %s643_s3 = inlined_call_operand.vmem [shape: f32[2,768], index: 3, kind: input, shape index: {}]   ;;  %s644_s4 = inlined_call_operand.vmem [shape: f32[2,3,256], index: 4, kind: output, shape index: {}]  }
   0x1   :  { %v25_v0 = vld [vmem:[%s640_s2 + $0x28] sm:$0xff]  ;;  %v24_v1 = vld [vmem:[%s640_s2 + $0x20] sm:$0xff]  ;;  %v23_v2 = vld [vmem:[%s640_s2 + $0x18] sm:$0xff]  ;;  %100 = vmatprep.mubr.f32.mxu0 %v477_v3  ;;  %106 = vmatprep.mubr.f32.mxu1 %v477_v3  ;;  %v479_v15 = vmov 1966171168  }
   0x2   :  { %62 = vmatprep.subr.mxu0 %v25_v0  ;;  %467 = vmatprep.subr.mxu1 %v25_v0  ;;  %v22_v4 = vld [vmem:[%s640_s2 + $0x10] sm:$0xff]  ;;  %v21_v5 = vld [vmem:[%s640_s2 + $0x8] sm:$0xff]  ;;  %v20_v6 = vld [vmem:[%s640_s2] sm:$0xff]  ;;  %v125_v14 = vshrl.u32 %v124_v13, 7  ;;  %v196_v16 = vunpack.c.l.s4 %v479_v15  ;;  %vm574_vm1 = vcmp.lt.s32.totalorder %v124_v13, 256 }
   0x3   :  { %63 = vmatpush1.msra.mxu0 %v24_v1  ;;  %470 = vmatpush1.msra.mxu1 %v24_v1  ;;  %v17_v7 = vld [vmem:[%s641_s0] sm:$0xff]  ;;  %v18_v8 = vld [vmem:[%s641_s0 + $0x8] sm:$0xff]  ;;  %v19_v10 = vld [vmem:[%s641_s0 + $0x10] sm:$0xff] }
   0x4   :  { %64 = vmatprep.subr.mxu0 %v23_v2  ;;  %468 = vmatprep.subr.mxu1 %v23_v2  ;;  %v121_v9 = vld [vmem:[%s642_s1] sm:$0x7]  ;;  %v122_v12 = vld [vmem:[%s642_s1 + $0x4] sm:$0x7]  ;;  %v138_v17 = vsub.s32 4, %v125_v14  ;;  %v126_v19 = vsub.s32 0, %v125_v14  ;;  %v197_v25 = vunpack.c.0.s8 %v196_v16 }
   0x5   :  { %65 = vmatpush1.msra.mxu0 %v22_v4  ;;  %471 = vmatpush1.msra.mxu1 %v22_v4  ;;  %v119_v18 = vld [vmem:[%s643_s3] sm:$0xff]  ;;  %v130_v20 = vsub.s32 2, %v125_v14  ;;  %v142_v21 = vsub.s32 6, %v125_v14  ;;  %v120_v22 = vld [vmem:[%s643_s3 + $0x8] sm:$0xf]  ;;  %v295_v23 = vsub.s32 1, %v125_v14 }
   0x6   :  { %66 = vmatprep.subr.mxu0 %v21_v5  ;;  %469 = vmatprep.subr.mxu1 %v21_v5  ;;  %v307_v24 = vsub.s32 5, %v125_v14  ;;  %v299_v26 = vsub.s32 3, %v125_v14  ;;  %v311_v27 = vsub.s32 7, %v125_v14  ;;  %v139_v28 = vrot.slane %v119_v18, %v138_v17 }
   0x7   :  { %67 = vmatpush1.msra.mxu0 %v20_v6  ;;  %472 = vmatpush1.msra.mxu1 %v20_v6  ;;  %v127_v29 = vrot.slane %v119_v18, %v126_v19  ;;  %v160_v30 = vrot.slane %v120_v22, %v126_v19  ;;  %v131_v31 = vrot.slane %v119_v18, %v130_v20 }
   0x8   :  { %459 = vmatmul.mubr.msk.f32.vlgmr.msra.gmra.mxu0 %vm26_vm0, %v17_v7  ;;  %460 = vmatmul.mubr.msk.f32.vlgmr.msra.gmra.mxu1 %vm26_vm0, %v18_v8  ;;  %v143_v32 = vrot.slane %v119_v18, %v142_v21  ;;  %v164_v33 = vrot.slane %v120_v22, %v130_v20  ;;  %v296_v35 = vrot.slane %v119_v18, %v295_v23 }
   0x9   :  { %112 = vmatprep.mubr.f32.mxu1 %v477_v3  ;;  %476 = vset.pattern.permute.xlu0 %v478_v11  ;;  %v308_v36 = vrot.slane %v119_v18, %v307_v24  ;;  %v328_v37 = vrot.slane %v120_v22, %v295_v23  ;;  %v549_v40 = vsub.s32 %v197_v25, %v125_v14 }
   0xa   :  { %187 = vperm.xlu0 %476, %v121_v9   ;;  %v551_v41 = vrot.slane %v119_v18, %v299_v26  ;;  %v553_v42 = vrot.slane %v119_v18, %v311_v27  ;;  %v555_v43 = vrot.slane %v120_v22, %v299_v26 }
   0xc   :  { %461 = vmatmul.mubr.msk.f32.gmra.mxu1 %vm26_vm0, %v19_v10 }
   0xe   :  { %349 = vperm.xlu0 %476, %v122_v12  }
  0x85   :  { %v545_v34 = vpop.permute.xlu0 %187 }
  0x86   :  { %v215_v47 = vrot.slane %v545_v34, 5  ;;  %v269_v53 = vrot.slane %v545_v34, 2 }
  0xc8   :  { %v102_v38 = vpop.f32.mrf.mxu0  ;;  %v547_v39 = vpop.f32.mrf.mxu1 }
  0xc9   :  { %v134_v44 = vmul.f32 %v127_v29, %v102_v38  ;;  %v146_v45 = vmul.f32 %v139_v28, %v102_v38  ;;  %v167_v46 = vmul.f32 %v160_v30, %v102_v38  ;;  %v179_v48 = vrot.slane %v102_v38, 3 }
  0xca   :  { %v241_v49 = vmul.f32 %v139_v28, %v547_v39  ;;  %v104_v50 = vpop.f32.mrf.mxu0  ;;  %v559_v51 = vpop.f32.mrf.mxu1  ;;  %v251_v52 = vmul.f32 %v160_v30, %v547_v39  ;;  %v239_v58 = vmul.f32 %v127_v29, %v547_v39  ;;  %v263_v61 = vrot.slane %v547_v39, 3 }
  0xcb   :  { %v150_v54 = vrot.slane %v146_v45, 1  ;;  %v171_v55 = vrot.slane %v167_v46, 2  ;;  %v135_v56 = vmul.f32 %v131_v31, %v104_v50  ;;  %v147_v57 = vmul.f32 %v143_v32, %v104_v50 }
  0xcc   :  { %v168_v59 = vmul.f32 %v164_v33, %v104_v50  ;;  %v242_v60 = vmul.f32 %v143_v32, %v559_v51  ;;  %v245_v0 = vrot.slane %v241_v49, 1  ;;  %v252_v1 = vmul.f32 %v164_v33, %v559_v51  ;;  %v568_v10 = vpop.f32.mrf.mxu1 }
  0xcd   :  { %v154_v62 = vadd.f32 %v150_v54, %v134_v44  ;;  %v151_v63 = vrot.slane %v147_v57, 1  ;;  %v180_v3 = vrot.slane %v104_v50, 3  ;;  %v240_v4 = vmul.f32 %v131_v31, %v559_v51 }
  0xce   :  { %v172_v2 = vrot.slane %v168_v59, 2  ;;  %v246_v5 = vrot.slane %v242_v60, 1  ;;  %v249_v8 = vadd.f32 %v245_v0, %v239_v58  ;;  %v255_v9 = vrot.slane %v251_v52, 2  ;;  %v116_v32 = vpop.f32.mrf.mxu1 }
  0xcf   :  { %v175_v6 = vadd.f32 %v171_v55, %v154_v62  ;;  %v155_v7 = vadd.f32 %v151_v63, %v135_v56  ;;  %v256_v12 = vrot.slane %v252_v1, 2  ;;  %v264_v14 = vrot.slane %v559_v51, 3  ;;  %v350_v62 = vpop.permute.xlu0 %349 }
  0xd0   :  { %v250_v11 = vadd.f32 %v246_v5, %v240_v4  ;;  %v315_v15 = vmul.f32 %v308_v36, %v547_v39  ;;  %v259_v18 = vadd.f32 %v255_v9, %v249_v8  ;;  %v303_v19 = vmul.f32 %v296_v35, %v547_v39 }
  0xd1   :  { %v176_v16 = vadd.f32 %v172_v2, %v155_v7  ;;  %v183_v17 = vadd.f32 %v179_v48, %v175_v6  ;;  %v335_v22 = vmul.f32 %v328_v37, %v547_v39  ;;  %v377_v23 = vmul.f32 %v308_v36, %v568_v10 }
  0xd2   :  { %v260_v21 = vadd.f32 %v256_v12, %v250_v11  ;;  %v387_v24 = vmul.f32 %v328_v37, %v568_v10  ;;  %v267_v26 = vadd.f32 %v263_v61, %v259_v18  ;;  %v319_v27 = vrot.slane %v315_v15, 1 }
  0xd3   :  { %v184_v25 = vadd.f32 %v180_v3, %v176_v16  ;;  %v375_v28 = vmul.f32 %v296_v35, %v568_v10  ;;  %v190_v29 = vadd.f32 %v545_v34, %v183_v17  ;;  %v217_v13 = vadd.f32 %v215_v47, %v183_v17 }
  0xd4   :  { %v268_v30 = vadd.f32 %v264_v14, %v260_v21  ;;  %v381_v31 = vrot.slane %v377_v23, 1  ;;  %v271_v44 = vadd.f32 %v269_v53, %v267_v26  ;;  %v391_v36 = vrot.slane %v387_v24, 2 }
  0xd5   :  { %v191_v33 = vadd.f32 %v545_v34, %v184_v25  ;;  %v218_v38 = vadd.f32 %v215_v47, %v184_v25  ;;  %v304_v37 = vmul.f32 %v551_v41, %v559_v51  ;;  %v316_v46 = vmul.f32 %v553_v42, %v559_v51 }
  0xd6   :  { %v272_v45 = vadd.f32 %v269_v53, %v268_v30  ;;  %v336_v35 = vmul.f32 %v555_v43, %v559_v51  ;;  %v385_v50 = vadd.f32 %v381_v31, %v375_v28  ;;  %v378_v52 = vmul.f32 %v553_v42, %v116_v32 }
  0xd7   :  { %v194_v48 = vcombine.low %v190_v29, %v191_v33  ;;  %v221_v49 = vcombine.high %v217_v13, %v218_v38  ;;  %v320_v34 = vrot.slane %v316_v46, 1  ;;  %v376_v47 = vmul.f32 %v551_v41, %v116_v32 }
  0xd8   :  { %v275_v54 = vcombine.low %v271_v44, %v272_v45  ;;  %v388_v53 = vmul.f32 %v555_v43, %v116_v32  ;;  %v340_v57 = vrot.slane %v336_v35, 2  ;;  %v382_v58 = vrot.slane %v378_v52, 1 }
  0xd9   :  { %v201_v55 = vrot.slane %v194_v48, %v549_v40  ;;  %v228_v56 = vrot.slane %v221_v49, %v549_v40  ;;  %v324_v51 = vadd.f32 %v320_v34, %v304_v37  ;;  %v323_v63 = vadd.f32 %v319_v27, %v303_v19 }
  0xda   :  { %v282_v59 = vrot.slane %v275_v54, %v549_v40  ;;  %v392_v60 = vrot.slane %v388_v53, 2  ;;  %v386_v1 = vadd.f32 %v382_v58, %v376_v47  ;;  %v339_v41 = vrot.slane %v335_v22, 2 }
  0xdb   :  { %v208_v42 = vrot.slane %v201_v55, %v549_v40  ;;  %v235_v0 = vrot.slane %v228_v56, %v549_v40  ;;  %v399_v2 = vrot.slane %v568_v10, 3  ;;  %v344_v3 = vadd.f32 %v340_v57, %v324_v51 }
  0xdc   :  { %v289_v43 = vrot.slane %v282_v59, %v549_v40  ;;  %v395_v4 = vadd.f32 %v391_v36, %v385_v50  ;;  %v396_v5 = vadd.f32 %v392_v60, %v386_v1  ;;  %v400_v6 = vrot.slane %v116_v32, 3 }
  0xdd   :  { %214 = vst.msk [vmem:[%s644_s4] ss:$4 sm:$0x3] %vm574_vm1, %v208_v42  ;;  %462 = vst.msk [vmem:[%s644_s4 + $0x1] ss:$4 sm:$0x3] %vm574_vm1, %v235_v0  ;;  %v343_v7 = vadd.f32 %v339_v41, %v323_v63  ;;  %v346_v9 = vadd.f32 %v344_v3, %v264_v14 }
  0xde   :  { %v351_v8 = vrot.slane %v350_v62, 4  ;;  %463 = vst.msk [vmem:[%s644_s4 + $0x2] ss:$4 sm:$0x3] %vm574_vm1, %v289_v43  ;;  %v403_v10 = vadd.f32 %v399_v2, %v395_v4  ;;  %v405_v11 = vrot.slane %v350_v62, 1  ;;  %v404_v12 = vadd.f32 %v400_v6, %v396_v5 }
  0xdf   :  { %v345_v15 = vadd.f32 %v343_v7, %v263_v61  ;;  %v429_v16 = vrot.slane %v350_v62, 6 }
  0xe0   :  { %v354_v17 = vadd.f32 %v351_v8, %v346_v9  ;;  %v407_v18 = vadd.f32 %v405_v11, %v403_v10  ;;  %v408_v21 = vadd.f32 %v405_v11, %v404_v12 }
  0xe1   :  { %v353_v19 = vadd.f32 %v351_v8, %v345_v15  ;;  %v431_v22 = vadd.f32 %v429_v16, %v403_v10  ;;  %v432_v23 = vadd.f32 %v429_v16, %v404_v12 }
  0xe2   :  { %v411_v25 = vcombine.low %v407_v18, %v408_v21 }
  0xe3   :  { %v357_v24 = vcombine.high %v353_v19, %v354_v17  ;;  %v435_v26 = vcombine.high %v431_v22, %v432_v23 }
  0xe4   :  { %v418_v14 = vrot.slane %v411_v25, %v549_v40 }
  0xe5   :  { %v364_v27 = vrot.slane %v357_v24, %v549_v40  ;;  %v442_v28 = vrot.slane %v435_v26, %v549_v40 }
  0xe6   :  { %v425_v39 = vrot.slane %v418_v14, %v549_v40 }
  0xe7   :  { %v371_v29 = vrot.slane %v364_v27, %v549_v40  ;;  %v449_v61 = vrot.slane %v442_v28, %v549_v40 }
  0xe8   :  { %465 = vst.msk [vmem:[%s644_s4 + $0x9] ss:$4 sm:$0x3] %vm574_vm1, %v425_v39 }
  0xe9   :  { %464 = vst.msk [vmem:[%s644_s4 + $0x8] ss:$4 sm:$0x3] %vm574_vm1, %v371_v29  ;;  %466 = vst.msk [vmem:[%s644_s4 + $0xa] ss:$4 sm:$0x3] %vm574_vm1, %v449_v61 }

</bundles_post_ra>
